<compile_context>
chip_gen: v7x
topology: tpu7x:2x2x1
jax: 0.10.0
libtpu: 0.0.40
codegen_flags: <defaults>
</compile_context>

<pallas_src>
import math
import functools

import jax
import jax.numpy as jnp
from jax import lax
from jax.experimental import pallas as pl
from jax.experimental.pallas import tpu as pltpu


def _mha_kernel(q_ref, h_ref, m_ref, wq_ref, wkv_ref, wo_ref, out_ref,
                *, n_heads, key_dim, val_dim):
    tb, nq, d = q_ref.shape
    _, gs, _ = h_ref.shape
    e = out_ref.shape[-1]
    hk = n_heads * key_dim

    # ---- wide projections (bf16 operands, fp32 accumulation); norm_factor pre-folded in Wq
    qflat = q_ref[...].reshape(tb * nq, d)                    # bf16
    hflat = h_ref[...].reshape(tb * gs, d)                    # bf16
    q_all = jnp.dot(qflat, wq_ref[...], preferred_element_type=jnp.float32)   # (tb*nq, H*dk)
    kv_all = jnp.dot(hflat, wkv_ref[...], preferred_element_type=jnp.float32) # (tb*gs, H*(dk+dv))

    q_all = q_all.reshape(tb, nq, hk).astype(jnp.bfloat16)
    kv_all = kv_all.reshape(tb, gs, hk + n_heads * val_dim).astype(jnp.bfloat16)
    wo = wo_ref[...]                                          # (H*dv, e) bf16, VMEM-resident

    # Mask handling hoisted out of the head loop: one int8 load, one bool compare,
    # one precomputed post-softmax keep multiplier reused by every head.
    maskb = m_ref[...].astype(jnp.float32) > 0.0              # (tb, nq, gs) bool
    keep = jnp.where(maskb, jnp.float32(0.0), jnp.float32(1.0))

    # ---- per-head attention; output projection accumulated (no concatenate / head slab) --
    out_acc = jnp.zeros((tb * nq, e), jnp.float32)
    for hd in range(n_heads):
        qh = q_all[:, :, hd * key_dim:(hd + 1) * key_dim]                 # (tb, nq, dk)
        kh = kv_all[:, :, hd * key_dim:(hd + 1) * key_dim]                # (tb, gs, dk)
        vh = kv_all[:, :, hk + hd * val_dim:hk + (hd + 1) * val_dim]      # (tb, gs, dv)

        # Q @ K^T without materializing a transpose: contract last dims, batch over tb.
        compat = lax.dot_general(
            qh, kh, dimension_numbers=(((2,), (2,)), ((0,), (0,))),
            preferred_element_type=jnp.float32)                           # (tb, nq, gs)
        compat = jnp.where(maskb, jnp.float32(-1.0e11), compat)

        # softmax over graph_size (fp32), EUP reciprocal, then post-softmax zeroing.
        cmax = jnp.max(compat, axis=-1, keepdims=True)
        ex = jnp.exp(compat - cmax)
        denom = jnp.sum(ex, axis=-1, keepdims=True)
        attn = ex * pl.reciprocal(denom, approx=True) * keep              # attnc[mask] = 0

        # attn @ V, batched over tb.
        head = lax.dot_general(
            attn.astype(jnp.bfloat16), vh,
            dimension_numbers=(((2,), (1,)), ((0,), (0,))),
            preferred_element_type=jnp.float32)                           # (tb, nq, dv)

        # Fused output projection for this head, accumulated in fp32.
        head2 = head.reshape(tb * nq, val_dim).astype(jnp.bfloat16)
        out_acc = out_acc + jnp.dot(head2, wo[hd * val_dim:(hd + 1) * val_dim, :],
                                    preferred_element_type=jnp.float32)   # (tb*nq, e)

    out_ref[...] = out_acc.reshape(tb, nq, e)


def _estimate_vmem_bytes(tb, nq, gs, d, n_heads, key_dim, val_dim, e):
    """Rough per-grid-step VMEM working set (bytes): double-buffered I/O tiles, resident
    weights, projection outputs, attention intermediates, accumulators."""
    bf, f4 = 2, 4
    hk = n_heads * key_dim
    hkv = n_heads * (key_dim + val_dim)
    hv = n_heads * val_dim
    io_in = 2 * (tb * nq * d * bf + tb * gs * d * bf + tb * nq * gs * 1)
    io_out = 2 * tb * nq * e * f4
    weights = (d * hk + d * hkv + hv * e) * bf
    proj = (tb * nq * hk + tb * gs * hkv) * (f4 + bf)
    attn = 3 * tb * nq * gs * f4
    acc = tb * nq * e * f4 + tb * nq * val_dim * f4
    return io_in + io_out + weights + proj + attn + acc


def _pick_tile_b(B, nq, gs, d, n_heads, key_dim, val_dim, e,
                 vmem_budget_bytes=28 * 1024 * 1024, target_rows=1024):
    """Largest batch tile whose working set fits the (v7x-sized) VMEM budget, targeting
    ~512-1024 matmul rows per step; always leave >= 2 grid steps when B allows so both
    v7x TensorCores get work under the 'parallel' grid axis."""
    rows = max(nq, gs, 1)
    divisors = [t for t in range(1, B + 1) if B % t == 0]
    fits = [t for t in divisors
            if t * rows <= target_rows
            and _estimate_vmem_bytes(t, nq, gs, d, n_heads, key_dim, val_dim, e)
            <= vmem_budget_bytes]
    best = max(fits) if fits else 1
    if B // best < 2 and B >= 2:
        two_step = [t for t in divisors if B // t >= 2]
        if two_step:
            best = max(two_step)
    return best


def multi_head_attention(q, h, mask, W_query, W_key, W_val, W_out, norm_factor,
                         tile_b=None):
    """q: (B, n_query, D), h: (B, graph_size, D) or None, mask: (B, n_query, graph_size) bool.
    Returns (out, None, old_mask) like the PyTorch module."""
    if h is None:
        h = q   # TODO(synk): fuse the Q projection into the K|V matmul for self-attention.
    B, n_query, input_dim = q.shape
    _, graph_size, _ = h.shape
    n_heads, _, key_dim = W_query.shape
    val_dim = W_val.shape[-1]
    embed_dim = W_out.shape[-1]

    if tile_b is None:
        tile_b = _pick_tile_b(B, n_query, graph_size, input_dim,
                              n_heads, key_dim, val_dim, embed_dim)
    assert B % tile_b == 0, "tile_b must divide B"

    # Stack per-head weights into wide bf16 matrices (single wide projections in-kernel).
    # norm_factor is folded into the Q weights; K|V projections are fused.
    wq_s = (jnp.transpose(W_query, (1, 0, 2)).reshape(input_dim, n_heads * key_dim)
            * jnp.float32(norm_factor)).astype(jnp.bfloat16)
    wk_s = jnp.transpose(W_key, (1, 0, 2)).reshape(input_dim, n_heads * key_dim)
    wv_s = jnp.transpose(W_val, (1, 0, 2)).reshape(input_dim, n_heads * val_dim)
    wkv_s = jnp.concatenate([wk_s, wv_s], axis=1).astype(jnp.bfloat16)
    # torch does W_out.view(-1, E) against heads of width n_heads*val_dim (requires
    # key_dim == val_dim, as in the module's default construction).
    wo_s = W_out.reshape(-1, embed_dim).astype(jnp.bfloat16)
    assert wo_s.shape[0] == n_heads * val_dim, "W_out rows must equal n_heads*val_dim"

    q_bf = q.astype(jnp.bfloat16)
    h_bf = h.astype(jnp.bfloat16)
    mask_i8 = mask.astype(jnp.int8)

    est = _estimate_vmem_bytes(tile_b, n_query, graph_size, input_dim,
                               n_heads, key_dim, val_dim, embed_dim)
    vmem_limit = int(min(56 * 1024 * 1024, max(4 * est, 16 * 1024 * 1024)))

    kernel = functools.partial(_mha_kernel, n_heads=n_heads,
                               key_dim=key_dim, val_dim=val_dim)

    # TODO(synk): for very long graph_size, tile the graph axis with an online-softmax
    # (flash-style) inner loop so compat/attn are capped at (tile_b, n_query, TILE_G).
    out = pl.pallas_call(
        kernel,
        out_shape=jax.ShapeDtypeStruct((B, n_query, embed_dim), jnp.float32),
        grid_spec=pltpu.PrefetchScalarGridSpec(
            num_scalar_prefetch=0,
            grid=(B // tile_b,),
            in_specs=[
                pl.BlockSpec((tile_b, n_query, input_dim), lambda b: (b, 0, 0)),
                pl.BlockSpec((tile_b, graph_size, input_dim), lambda b: (b, 0, 0)),
                pl.BlockSpec((tile_b, n_query, graph_size), lambda b: (b, 0, 0)),
                # Weights: full-array blocks, constant index -> DMA'd once, VMEM-resident.
                pl.BlockSpec((input_dim, n_heads * key_dim), lambda b: (0, 0)),
                pl.BlockSpec((input_dim, n_heads * (key_dim + val_dim)), lambda b: (0, 0)),
                pl.BlockSpec((n_heads * val_dim, embed_dim), lambda b: (0, 0)),
            ],
            out_specs=pl.BlockSpec((tile_b, n_query, embed_dim), lambda b: (b, 0, 0)),
        ),
        compiler_params=pltpu.CompilerParams(
            dimension_semantics=("parallel",),
            vmem_limit_bytes=vmem_limit),
    )(q_bf, h_bf, mask_i8, wq_s, wkv_s, wo_s)

    # Matches the PyTorch return signature: (out, None, old_mask)
    return out, None, mask


def reference_mha(q, h, mask, W_query, W_key, W_val, W_out, norm_factor):
    """Pure-JAX fp32 reference mirroring the PyTorch forward."""
    B, n_query, D = q.shape
    _, graph_size, _ = h.shape
    n_heads = W_query.shape[0]
    embed_dim = W_out.shape[-1]

    qflat = q.reshape(-1, D)
    hflat = h.reshape(-1, D)
    Q = jnp.matmul(qflat, W_query).reshape(n_heads, B, n_query, -1)
    K = jnp.matmul(hflat, W_key).reshape(n_heads, B, graph_size, -1)
    V = jnp.matmul(hflat, W_val).reshape(n_heads, B, graph_size, -1)

    compat = norm_factor * jnp.matmul(Q, jnp.swapaxes(K, 2, 3))
    m = jnp.broadcast_to(mask[None], compat.shape)
    compat = jnp.where(m, -1.0e11, compat)
    attn = jax.nn.softmax(compat, axis=-1)
    attn = jnp.where(m, 0.0, attn)
    heads = jnp.matmul(attn, V)                                   # (H, B, nq, dv)
    heads_p = jnp.transpose(heads, (1, 2, 0, 3)).reshape(B * n_query, -1)
    out = jnp.matmul(heads_p, W_out.reshape(-1, embed_dim)).reshape(B, n_query, embed_dim)
    return out


if __name__ == "__main__":
    # Canonical module config (embed_dim=128, 8 heads -> key_dim=val_dim=16); small B/seq.
    # embed_dim=128 keeps the output block lane-dense (unmasked 128-wide stores).
    n_heads = 8
    input_dim = 128
    embed_dim = 128
    key_dim = embed_dim // n_heads   # val_dim defaults to embed_dim // n_heads
    val_dim = key_dim
    B = 4
    n_query = 8
    graph_size = 16
    norm_factor = 1.0 / math.sqrt(key_dim)

    key = jax.random.PRNGKey(0)
    ks = jax.random.split(key, 8)

    # Parameter init matching init_parameters(): U(-stdv, stdv), stdv = 1/sqrt(last dim)
    def init_param(k, shape):
        stdv = 1.0 / math.sqrt(shape[-1])
        return jax.random.uniform(k, shape, jnp.float32, minval=-stdv, maxval=stdv)

    W_query = init_param(ks[0], (n_heads, input_dim, key_dim))
    W_key = init_param(ks[1], (n_heads, input_dim, key_dim))
    W_val = init_param(ks[2], (n_heads, input_dim, val_dim))
    W_out = init_param(ks[3], (n_heads, key_dim, embed_dim))

    q = jax.random.normal(ks[4], (B, n_query, input_dim), jnp.float32)
    h = jax.random.normal(ks[5], (B, graph_size, input_dim), jnp.float32)
    mask = jax.random.bernoulli(ks[6], p=0.25, shape=(B, n_query, graph_size))

    out, _, old_mask = multi_head_attention(
        q, h, mask, W_query, W_key, W_val, W_out, norm_factor)
    out = jax.block_until_ready(out)

    ref = reference_mha(q, h, mask, W_query, W_key, W_val, W_out, norm_factor)

    assert out.shape == (B, n_query, embed_dim)
    assert bool(jnp.all(old_mask == mask))
    # bf16 MXU operands (fp32 accumulation) + approx reciprocal -> loosened tolerance.
    assert bool(jnp.allclose(out, ref, atol=5e-2, rtol=5e-2)), "mismatch vs reference"
    print("KERNEL_OK")
</pallas_src>

<mosaic_0001>
module attributes {stable_mosaic.version = 11 : i64} {
  func.func @_mha_kernel(%arg0: i32, %arg1: memref<2x8x128xbf16, #tpu.memory_space<vmem>>, %arg2: memref<2x16x128xbf16, #tpu.memory_space<vmem>>, %arg3: memref<2x8x16xi8, #tpu.memory_space<vmem>>, %arg4: memref<128x128xbf16, #tpu.memory_space<vmem>>, %arg5: memref<128x256xbf16, #tpu.memory_space<vmem>>, %arg6: memref<128x128xbf16, #tpu.memory_space<vmem>>, %arg7: memref<2x8x128xf32, #tpu.memory_space<vmem>>) attributes {dimension_semantics = [#tpu.dimension_semantics<parallel>], iteration_bounds = array<i64: 2>, scalar_prefetch = 0 : i64, scratch_operands = 0 : i64, tpu.core_type = #tpu.core_type<tc>, window_params = [{transform_indices = @transform_0, window_bounds = array<i64: 2, 8, 128>}, {transform_indices = @transform_1, window_bounds = array<i64: 2, 16, 128>}, {transform_indices = @transform_2, window_bounds = array<i64: 2, 8, 16>}, {pipeline_mode = #tpu.pipeline_mode<synchronous>, transform_indices = @transform_3, window_bounds = array<i64: 128, 128>}, {pipeline_mode = #tpu.pipeline_mode<synchronous>, transform_indices = @transform_4, window_bounds = array<i64: 128, 256>}, {pipeline_mode = #tpu.pipeline_mode<synchronous>, transform_indices = @transform_5, window_bounds = array<i64: 128, 128>}, {transform_indices = @transform_6, window_bounds = array<i64: 2, 8, 128>}]} {
    %c0 = arith.constant 0 : index
    %c0_0 = arith.constant 0 : index
    %c0_1 = arith.constant 0 : index
    %0 = vector.load %arg1[%c0, %c0_0, %c0_1] : memref<2x8x128xbf16, #tpu.memory_space<vmem>>, vector<2x8x128xbf16>
    %1 = vector.shape_cast %0 : vector<2x8x128xbf16> to vector<16x128xbf16>
    %c0_2 = arith.constant 0 : index
    %c0_3 = arith.constant 0 : index
    %c0_4 = arith.constant 0 : index
    %2 = vector.load %arg2[%c0_2, %c0_3, %c0_4] : memref<2x16x128xbf16, #tpu.memory_space<vmem>>, vector<2x16x128xbf16>
    %3 = vector.shape_cast %2 : vector<2x16x128xbf16> to vector<32x128xbf16>
    %c0_5 = arith.constant 0 : index
    %c0_6 = arith.constant 0 : index
    %4 = vector.load %arg4[%c0_5, %c0_6] : memref<128x128xbf16, #tpu.memory_space<vmem>>, vector<128x128xbf16>
    %cst = arith.constant dense<0.000000e+00> : vector<16x128xf32>
    %5 = tpu.matmul %1, %4, %cst {dimension_numbers = #tpu.dot_dimension_numbers<[1], [0], [0], [1], [0, 0, 1, 1], [], []>} : vector<16x128xbf16>, vector<128x128xbf16>, vector<16x128xf32> -> vector<16x128xf32>
    %c0_7 = arith.constant 0 : index
    %c0_8 = arith.constant 0 : index
    %6 = vector.load %arg5[%c0_7, %c0_8] : memref<128x256xbf16, #tpu.memory_space<vmem>>, vector<128x256xbf16>
    %cst_9 = arith.constant dense<0.000000e+00> : vector<32x256xf32>
    %7 = tpu.matmul %3, %6, %cst_9 {dimension_numbers = #tpu.dot_dimension_numbers<[1], [0], [0], [1], [0, 0, 1, 1], [], []>} : vector<32x128xbf16>, vector<128x256xbf16>, vector<32x256xf32> -> vector<32x256xf32>
    %8 = vector.shape_cast %5 : vector<16x128xf32> to vector<2x8x128xf32>
    %9 = arith.truncf %8 : vector<2x8x128xf32> to vector<2x8x128xbf16>
    %10 = vector.shape_cast %7 : vector<32x256xf32> to vector<2x16x256xf32>
    %11 = arith.truncf %10 : vector<2x16x256xf32> to vector<2x16x256xbf16>
    %c0_10 = arith.constant 0 : index
    %c0_11 = arith.constant 0 : index
    %12 = vector.load %arg6[%c0_10, %c0_11] : memref<128x128xbf16, #tpu.memory_space<vmem>>, vector<128x128xbf16>
    %c0_12 = arith.constant 0 : index
    %c0_13 = arith.constant 0 : index
    %c0_14 = arith.constant 0 : index
    %13 = vector.load %arg3[%c0_12, %c0_13, %c0_14] : memref<2x8x16xi8, #tpu.memory_space<vmem>>, vector<2x8x16xi8>
    %14 = arith.sitofp %13 : vector<2x8x16xi8> to vector<2x8x16xf32>
    %cst_15 = arith.constant 0.000000e+00 : f32
    %15 = vector.broadcast %cst_15 : f32 to vector<2x8x16xf32>
    %16 = arith.cmpf ogt, %14, %15 : vector<2x8x16xf32>
    %cst_16 = arith.constant 0.000000e+00 : f32
    %cst_17 = arith.constant 1.000000e+00 : f32
    %17 = vector.broadcast %cst_16 : f32 to vector<2x8x16xf32>
    %18 = vector.broadcast %cst_17 : f32 to vector<2x8x16xf32>
    %19 = arith.select %16, %17, %18 : vector<2x8x16xi1>, vector<2x8x16xf32>
    %cst_18 = arith.constant 0.000000e+00 : f32
    %20 = vector.broadcast %cst_18 : f32 to vector<16x128xf32>
    %21 = vector.extract_strided_slice %9 {offsets = [0, 0, 0], sizes = [2, 8, 16], strides = [1, 1, 1]} : vector<2x8x128xbf16> to vector<2x8x16xbf16>
    %22 = vector.extract_strided_slice %11 {offsets = [0, 0, 0], sizes = [2, 16, 16], strides = [1, 1, 1]} : vector<2x16x256xbf16> to vector<2x16x16xbf16>
    %23 = vector.extract_strided_slice %11 {offsets = [0, 0, 128], sizes = [2, 16, 16], strides = [1, 1, 1]} : vector<2x16x256xbf16> to vector<2x16x16xbf16>
    %cst_19 = arith.constant dense<0.000000e+00> : vector<2x8x16xf32>
    %24 = tpu.matmul %21, %22, %cst_19 {dimension_numbers = #tpu.dot_dimension_numbers<[2], [2], [1], [1], [0, 0, 0, 1, 1, 1], [0], [0]>} : vector<2x8x16xbf16>, vector<2x16x16xbf16>, vector<2x8x16xf32> -> vector<2x8x16xf32>
    %cst_20 = arith.constant -9.99999979E+10 : f32
    %25 = vector.broadcast %cst_20 : f32 to vector<2x8x16xf32>
    %26 = arith.select %16, %25, %24 : vector<2x8x16xi1>, vector<2x8x16xf32>
    %cst_21 = arith.constant dense<0xFF800000> : vector<2x8xf32>
    %27 = vector.multi_reduction <maximumf>, %26, %cst_21 [2] : vector<2x8x16xf32> to vector<2x8xf32>
    %28 = vector.shape_cast %27 : vector<2x8xf32> to vector<2x8x1xf32>
    %29 = vector.broadcast %28 : vector<2x8x1xf32> to vector<2x8x16xf32>
    %30 = arith.subf %26, %29 : vector<2x8x16xf32>
    %31 = math.exp %30 : vector<2x8x16xf32>
    %cst_22 = arith.constant dense<0.000000e+00> : vector<2x8xf32>
    %32 = vector.multi_reduction <add>, %31, %cst_22 [2] : vector<2x8x16xf32> to vector<2x8xf32>
    %33 = vector.shape_cast %32 : vector<2x8xf32> to vector<2x8x1xf32>
    %34 = tpu.reciprocal %33 {approx = true} : vector<2x8x1xf32> -> vector<2x8x1xf32>
    %35 = vector.broadcast %34 : vector<2x8x1xf32> to vector<2x8x16xf32>
    %36 = arith.mulf %31, %35 : vector<2x8x16xf32>
    %37 = arith.mulf %36, %19 : vector<2x8x16xf32>
    %38 = arith.truncf %37 : vector<2x8x16xf32> to vector<2x8x16xbf16>
    %cst_23 = arith.constant dense<0.000000e+00> : vector<2x8x16xf32>
    %39 = tpu.matmul %38, %23, %cst_23 {dimension_numbers = #tpu.dot_dimension_numbers<[2], [1], [1], [2], [0, 0, 0, 1, 1, 2], [0], [0]>} : vector<2x8x16xbf16>, vector<2x16x16xbf16>, vector<2x8x16xf32> -> vector<2x8x16xf32>
    %40 = vector.shape_cast %39 : vector<2x8x16xf32> to vector<16x16xf32>
    %41 = arith.truncf %40 : vector<16x16xf32> to vector<16x16xbf16>
    %42 = vector.extract_strided_slice %12 {offsets = [0, 0], sizes = [16, 128], strides = [1, 1]} : vector<128x128xbf16> to vector<16x128xbf16>
    %cst_24 = arith.constant dense<0.000000e+00> : vector<16x128xf32>
    %43 = tpu.matmul %41, %42, %cst_24 {dimension_numbers = #tpu.dot_dimension_numbers<[1], [0], [0], [1], [0, 0, 1, 1], [], []>} : vector<16x16xbf16>, vector<16x128xbf16>, vector<16x128xf32> -> vector<16x128xf32>
    %44 = arith.addf %20, %43 : vector<16x128xf32>
    %45 = vector.extract_strided_slice %9 {offsets = [0, 0, 16], sizes = [2, 8, 16], strides = [1, 1, 1]} : vector<2x8x128xbf16> to vector<2x8x16xbf16>
    %46 = vector.extract_strided_slice %11 {offsets = [0, 0, 16], sizes = [2, 16, 16], strides = [1, 1, 1]} : vector<2x16x256xbf16> to vector<2x16x16xbf16>
    %47 = vector.extract_strided_slice %11 {offsets = [0, 0, 144], sizes = [2, 16, 16], strides = [1, 1, 1]} : vector<2x16x256xbf16> to vector<2x16x16xbf16>
    %cst_25 = arith.constant dense<0.000000e+00> : vector<2x8x16xf32>
    %48 = tpu.matmul %45, %46, %cst_25 {dimension_numbers = #tpu.dot_dimension_numbers<[2], [2], [1], [1], [0, 0, 0, 1, 1, 1], [0], [0]>} : vector<2x8x16xbf16>, vector<2x16x16xbf16>, vector<2x8x16xf32> -> vector<2x8x16xf32>
    %cst_26 = arith.constant -9.99999979E+10 : f32
    %49 = vector.broadcast %cst_26 : f32 to vector<2x8x16xf32>
    %50 = arith.select %16, %49, %48 : vector<2x8x16xi1>, vector<2x8x16xf32>
    %cst_27 = arith.constant dense<0xFF800000> : vector<2x8xf32>
    %51 = vector.multi_reduction <maximumf>, %50, %cst_27 [2] : vector<2x8x16xf32> to vector<2x8xf32>
    %52 = vector.shape_cast %51 : vector<2x8xf32> to vector<2x8x1xf32>
    %53 = vector.broadcast %52 : vector<2x8x1xf32> to vector<2x8x16xf32>
    %54 = arith.subf %50, %53 : vector<2x8x16xf32>
    %55 = math.exp %54 : vector<2x8x16xf32>
    %cst_28 = arith.constant dense<0.000000e+00> : vector<2x8xf32>
    %56 = vector.multi_reduction <add>, %55, %cst_28 [2] : vector<2x8x16xf32> to vector<2x8xf32>
    %57 = vector.shape_cast %56 : vector<2x8xf32> to vector<2x8x1xf32>
    %58 = tpu.reciprocal %57 {approx = true} : vector<2x8x1xf32> -> vector<2x8x1xf32>
    %59 = vector.broadcast %58 : vector<2x8x1xf32> to vector<2x8x16xf32>
    %60 = arith.mulf %55, %59 : vector<2x8x16xf32>
    %61 = arith.mulf %60, %19 : vector<2x8x16xf32>
    %62 = arith.truncf %61 : vector<2x8x16xf32> to vector<2x8x16xbf16>
    %cst_29 = arith.constant dense<0.000000e+00> : vector<2x8x16xf32>
    %63 = tpu.matmul %62, %47, %cst_29 {dimension_numbers = #tpu.dot_dimension_numbers<[2], [1], [1], [2], [0, 0, 0, 1, 1, 2], [0], [0]>} : vector<2x8x16xbf16>, vector<2x16x16xbf16>, vector<2x8x16xf32> -> vector<2x8x16xf32>
    %64 = vector.shape_cast %63 : vector<2x8x16xf32> to vector<16x16xf32>
    %65 = arith.truncf %64 : vector<16x16xf32> to vector<16x16xbf16>
    %66 = vector.extract_strided_slice %12 {offsets = [16, 0], sizes = [16, 128], strides = [1, 1]} : vector<128x128xbf16> to vector<16x128xbf16>
    %cst_30 = arith.constant dense<0.000000e+00> : vector<16x128xf32>
    %67 = tpu.matmul %65, %66, %cst_30 {dimension_numbers = #tpu.dot_dimension_numbers<[1], [0], [0], [1], [0, 0, 1, 1], [], []>} : vector<16x16xbf16>, vector<16x128xbf16>, vector<16x128xf32> -> vector<16x128xf32>
    %68 = arith.addf %44, %67 : vector<16x128xf32>
    %69 = vector.extract_strided_slice %9 {offsets = [0, 0, 32], sizes = [2, 8, 16], strides = [1, 1, 1]} : vector<2x8x128xbf16> to vector<2x8x16xbf16>
    %70 = vector.extract_strided_slice %11 {offsets = [0, 0, 32], sizes = [2, 16, 16], strides = [1, 1, 1]} : vector<2x16x256xbf16> to vector<2x16x16xbf16>
    %71 = vector.extract_strided_slice %11 {offsets = [0, 0, 160], sizes = [2, 16, 16], strides = [1, 1, 1]} : vector<2x16x256xbf16> to vector<2x16x16xbf16>
    %cst_31 = arith.constant dense<0.000000e+00> : vector<2x8x16xf32>
    %72 = tpu.matmul %69, %70, %cst_31 {dimension_numbers = #tpu.dot_dimension_numbers<[2], [2], [1], [1], [0, 0, 0, 1, 1, 1], [0], [0]>} : vector<2x8x16xbf16>, vector<2x16x16xbf16>, vector<2x8x16xf32> -> vector<2x8x16xf32>
    %cst_32 = arith.constant -9.99999979E+10 : f32
    %73 = vector.broadcast %cst_32 : f32 to vector<2x8x16xf32>
    %74 = arith.select %16, %73, %72 : vector<2x8x16xi1>, vector<2x8x16xf32>
    %cst_33 = arith.constant dense<0xFF800000> : vector<2x8xf32>
    %75 = vector.multi_reduction <maximumf>, %74, %cst_33 [2] : vector<2x8x16xf32> to vector<2x8xf32>
    %76 = vector.shape_cast %75 : vector<2x8xf32> to vector<2x8x1xf32>
    %77 = vector.broadcast %76 : vector<2x8x1xf32> to vector<2x8x16xf32>
    %78 = arith.subf %74, %77 : vector<2x8x16xf32>
    %79 = math.exp %78 : vector<2x8x16xf32>
    %cst_34 = arith.constant dense<0.000000e+00> : vector<2x8xf32>
    %80 = vector.multi_reduction <add>, %79, %cst_34 [2] : vector<2x8x16xf32> to vector<2x8xf32>
    %81 = vector.shape_cast %80 : vector<2x8xf32> to vector<2x8x1xf32>
    %82 = tpu.reciprocal %81 {approx = true} : vector<2x8x1xf32> -> vector<2x8x1xf32>
    %83 = vector.broadcast %82 : vector<2x8x1xf32> to vector<2x8x16xf32>
    %84 = arith.mulf %79, %83 : vector<2x8x16xf32>
    %85 = arith.mulf %84, %19 : vector<2x8x16xf32>
    %86 = arith.truncf %85 : vector<2x8x16xf32> to vector<2x8x16xbf16>
    %cst_35 = arith.constant dense<0.000000e+00> : vector<2x8x16xf32>
    %87 = tpu.matmul %86, %71, %cst_35 {dimension_numbers = #tpu.dot_dimension_numbers<[2], [1], [1], [2], [0, 0, 0, 1, 1, 2], [0], [0]>} : vector<2x8x16xbf16>, vector<2x16x16xbf16>, vector<2x8x16xf32> -> vector<2x8x16xf32>
    %88 = vector.shape_cast %87 : vector<2x8x16xf32> to vector<16x16xf32>
    %89 = arith.truncf %88 : vector<16x16xf32> to vector<16x16xbf16>
    %90 = vector.extract_strided_slice %12 {offsets = [32, 0], sizes = [16, 128], strides = [1, 1]} : vector<128x128xbf16> to vector<16x128xbf16>
    %cst_36 = arith.constant dense<0.000000e+00> : vector<16x128xf32>
    %91 = tpu.matmul %89, %90, %cst_36 {dimension_numbers = #tpu.dot_dimension_numbers<[1], [0], [0], [1], [0, 0, 1, 1], [], []>} : vector<16x16xbf16>, vector<16x128xbf16>, vector<16x128xf32> -> vector<16x128xf32>
    %92 = arith.addf %68, %91 : vector<16x128xf32>
    %93 = vector.extract_strided_slice %9 {offsets = [0, 0, 48], sizes = [2, 8, 16], strides = [1, 1, 1]} : vector<2x8x128xbf16> to vector<2x8x16xbf16>
    %94 = vector.extract_strided_slice %11 {offsets = [0, 0, 48], sizes = [2, 16, 16], strides = [1, 1, 1]} : vector<2x16x256xbf16> to vector<2x16x16xbf16>
    %95 = vector.extract_strided_slice %11 {offsets = [0, 0, 176], sizes = [2, 16, 16], strides = [1, 1, 1]} : vector<2x16x256xbf16> to vector<2x16x16xbf16>
    %cst_37 = arith.constant dense<0.000000e+00> : vector<2x8x16xf32>
    %96 = tpu.matmul %93, %94, %cst_37 {dimension_numbers = #tpu.dot_dimension_numbers<[2], [2], [1], [1], [0, 0, 0, 1, 1, 1], [0], [0]>} : vector<2x8x16xbf16>, vector<2x16x16xbf16>, vector<2x8x16xf32> -> vector<2x8x16xf32>
    %cst_38 = arith.constant -9.99999979E+10 : f32
    %97 = vector.broadcast %cst_38 : f32 to vector<2x8x16xf32>
    %98 = arith.select %16, %97, %96 : vector<2x8x16xi1>, vector<2x8x16xf32>
    %cst_39 = arith.constant dense<0xFF800000> : vector<2x8xf32>
    %99 = vector.multi_reduction <maximumf>, %98, %cst_39 [2] : vector<2x8x16xf32> to vector<2x8xf32>
    %100 = vector.shape_cast %99 : vector<2x8xf32> to vector<2x8x1xf32>
    %101 = vector.broadcast %100 : vector<2x8x1xf32> to vector<2x8x16xf32>
    %102 = arith.subf %98, %101 : vector<2x8x16xf32>
    %103 = math.exp %102 : vector<2x8x16xf32>
    %cst_40 = arith.constant dense<0.000000e+00> : vector<2x8xf32>
    %104 = vector.multi_reduction <add>, %103, %cst_40 [2] : vector<2x8x16xf32> to vector<2x8xf32>
    %105 = vector.shape_cast %104 : vector<2x8xf32> to vector<2x8x1xf32>
    %106 = tpu.reciprocal %105 {approx = true} : vector<2x8x1xf32> -> vector<2x8x1xf32>
    %107 = vector.broadcast %106 : vector<2x8x1xf32> to vector<2x8x16xf32>
    %108 = arith.mulf %103, %107 : vector<2x8x16xf32>
    %109 = arith.mulf %108, %19 : vector<2x8x16xf32>
    %110 = arith.truncf %109 : vector<2x8x16xf32> to vector<2x8x16xbf16>
    %cst_41 = arith.constant dense<0.000000e+00> : vector<2x8x16xf32>
    %111 = tpu.matmul %110, %95, %cst_41 {dimension_numbers = #tpu.dot_dimension_numbers<[2], [1], [1], [2], [0, 0, 0, 1, 1, 2], [0], [0]>} : vector<2x8x16xbf16>, vector<2x16x16xbf16>, vector<2x8x16xf32> -> vector<2x8x16xf32>
    %112 = vector.shape_cast %111 : vector<2x8x16xf32> to vector<16x16xf32>
    %113 = arith.truncf %112 : vector<16x16xf32> to vector<16x16xbf16>
    %114 = vector.extract_strided_slice %12 {offsets = [48, 0], sizes = [16, 128], strides = [1, 1]} : vector<128x128xbf16> to vector<16x128xbf16>
    %cst_42 = arith.constant dense<0.000000e+00> : vector<16x128xf32>
    %115 = tpu.matmul %113, %114, %cst_42 {dimension_numbers = #tpu.dot_dimension_numbers<[1], [0], [0], [1], [0, 0, 1, 1], [], []>} : vector<16x16xbf16>, vector<16x128xbf16>, vector<16x128xf32> -> vector<16x128xf32>
    %116 = arith.addf %92, %115 : vector<16x128xf32>
    %117 = vector.extract_strided_slice %9 {offsets = [0, 0, 64], sizes = [2, 8, 16], strides = [1, 1, 1]} : vector<2x8x128xbf16> to vector<2x8x16xbf16>
    %118 = vector.extract_strided_slice %11 {offsets = [0, 0, 64], sizes = [2, 16, 16], strides = [1, 1, 1]} : vector<2x16x256xbf16> to vector<2x16x16xbf16>
    %119 = vector.extract_strided_slice %11 {offsets = [0, 0, 192], sizes = [2, 16, 16], strides = [1, 1, 1]} : vector<2x16x256xbf16> to vector<2x16x16xbf16>
    %cst_43 = arith.constant dense<0.000000e+00> : vector<2x8x16xf32>
    %120 = tpu.matmul %117, %118, %cst_43 {dimension_numbers = #tpu.dot_dimension_numbers<[2], [2], [1], [1], [0, 0, 0, 1, 1, 1], [0], [0]>} : vector<2x8x16xbf16>, vector<2x16x16xbf16>, vector<2x8x16xf32> -> vector<2x8x16xf32>
    %cst_44 = arith.constant -9.99999979E+10 : f32
    %121 = vector.broadcast %cst_44 : f32 to vector<2x8x16xf32>
    %122 = arith.select %16, %121, %120 : vector<2x8x16xi1>, vector<2x8x16xf32>
    %cst_45 = arith.constant dense<0xFF800000> : vector<2x8xf32>
    %123 = vector.multi_reduction <maximumf>, %122, %cst_45 [2] : vector<2x8x16xf32> to vector<2x8xf32>
    %124 = vector.shape_cast %123 : vector<2x8xf32> to vector<2x8x1xf32>
    %125 = vector.broadcast %124 : vector<2x8x1xf32> to vector<2x8x16xf32>
    %126 = arith.subf %122, %125 : vector<2x8x16xf32>
    %127 = math.exp %126 : vector<2x8x16xf32>
    %cst_46 = arith.constant dense<0.000000e+00> : vector<2x8xf32>
    %128 = vector.multi_reduction <add>, %127, %cst_46 [2] : vector<2x8x16xf32> to vector<2x8xf32>
    %129 = vector.shape_cast %128 : vector<2x8xf32> to vector<2x8x1xf32>
    %130 = tpu.reciprocal %129 {approx = true} : vector<2x8x1xf32> -> vector<2x8x1xf32>
    %131 = vector.broadcast %130 : vector<2x8x1xf32> to vector<2x8x16xf32>
    %132 = arith.mulf %127, %131 : vector<2x8x16xf32>
    %133 = arith.mulf %132, %19 : vector<2x8x16xf32>
    %134 = arith.truncf %133 : vector<2x8x16xf32> to vector<2x8x16xbf16>
    %cst_47 = arith.constant dense<0.000000e+00> : vector<2x8x16xf32>
    %135 = tpu.matmul %134, %119, %cst_47 {dimension_numbers = #tpu.dot_dimension_numbers<[2], [1], [1], [2], [0, 0, 0, 1, 1, 2], [0], [0]>} : vector<2x8x16xbf16>, vector<2x16x16xbf16>, vector<2x8x16xf32> -> vector<2x8x16xf32>
    %136 = vector.shape_cast %135 : vector<2x8x16xf32> to vector<16x16xf32>
    %137 = arith.truncf %136 : vector<16x16xf32> to vector<16x16xbf16>
    %138 = vector.extract_strided_slice %12 {offsets = [64, 0], sizes = [16, 128], strides = [1, 1]} : vector<128x128xbf16> to vector<16x128xbf16>
    %cst_48 = arith.constant dense<0.000000e+00> : vector<16x128xf32>
    %139 = tpu.matmul %137, %138, %cst_48 {dimension_numbers = #tpu.dot_dimension_numbers<[1], [0], [0], [1], [0, 0, 1, 1], [], []>} : vector<16x16xbf16>, vector<16x128xbf16>, vector<16x128xf32> -> vector<16x128xf32>
    %140 = arith.addf %116, %139 : vector<16x128xf32>
    %141 = vector.extract_strided_slice %9 {offsets = [0, 0, 80], sizes = [2, 8, 16], strides = [1, 1, 1]} : vector<2x8x128xbf16> to vector<2x8x16xbf16>
    %142 = vector.extract_strided_slice %11 {offsets = [0, 0, 80], sizes = [2, 16, 16], strides = [1, 1, 1]} : vector<2x16x256xbf16> to vector<2x16x16xbf16>
    %143 = vector.extract_strided_slice %11 {offsets = [0, 0, 208], sizes = [2, 16, 16], strides = [1, 1, 1]} : vector<2x16x256xbf16> to vector<2x16x16xbf16>
    %cst_49 = arith.constant dense<0.000000e+00> : vector<2x8x16xf32>
    %144 = tpu.matmul %141, %142, %cst_49 {dimension_numbers = #tpu.dot_dimension_numbers<[2], [2], [1], [1], [0, 0, 0, 1, 1, 1], [0], [0]>} : vector<2x8x16xbf16>, vector<2x16x16xbf16>, vector<2x8x16xf32> -> vector<2x8x16xf32>
    %cst_50 = arith.constant -9.99999979E+10 : f32
    %145 = vector.broadcast %cst_50 : f32 to vector<2x8x16xf32>
    %146 = arith.select %16, %145, %144 : vector<2x8x16xi1>, vector<2x8x16xf32>
    %cst_51 = arith.constant dense<0xFF800000> : vector<2x8xf32>
    %147 = vector.multi_reduction <maximumf>, %146, %cst_51 [2] : vector<2x8x16xf32> to vector<2x8xf32>
    %148 = vector.shape_cast %147 : vector<2x8xf32> to vector<2x8x1xf32>
    %149 = vector.broadcast %148 : vector<2x8x1xf32> to vector<2x8x16xf32>
    %150 = arith.subf %146, %149 : vector<2x8x16xf32>
    %151 = math.exp %150 : vector<2x8x16xf32>
    %cst_52 = arith.constant dense<0.000000e+00> : vector<2x8xf32>
    %152 = vector.multi_reduction <add>, %151, %cst_52 [2] : vector<2x8x16xf32> to vector<2x8xf32>
    %153 = vector.shape_cast %152 : vector<2x8xf32> to vector<2x8x1xf32>
    %154 = tpu.reciprocal %153 {approx = true} : vector<2x8x1xf32> -> vector<2x8x1xf32>
    %155 = vector.broadcast %154 : vector<2x8x1xf32> to vector<2x8x16xf32>
    %156 = arith.mulf %151, %155 : vector<2x8x16xf32>
    %157 = arith.mulf %156, %19 : vector<2x8x16xf32>
    %158 = arith.truncf %157 : vector<2x8x16xf32> to vector<2x8x16xbf16>
    %cst_53 = arith.constant dense<0.000000e+00> : vector<2x8x16xf32>
    %159 = tpu.matmul %158, %143, %cst_53 {dimension_numbers = #tpu.dot_dimension_numbers<[2], [1], [1], [2], [0, 0, 0, 1, 1, 2], [0], [0]>} : vector<2x8x16xbf16>, vector<2x16x16xbf16>, vector<2x8x16xf32> -> vector<2x8x16xf32>
    %160 = vector.shape_cast %159 : vector<2x8x16xf32> to vector<16x16xf32>
    %161 = arith.truncf %160 : vector<16x16xf32> to vector<16x16xbf16>
    %162 = vector.extract_strided_slice %12 {offsets = [80, 0], sizes = [16, 128], strides = [1, 1]} : vector<128x128xbf16> to vector<16x128xbf16>
    %cst_54 = arith.constant dense<0.000000e+00> : vector<16x128xf32>
    %163 = tpu.matmul %161, %162, %cst_54 {dimension_numbers = #tpu.dot_dimension_numbers<[1], [0], [0], [1], [0, 0, 1, 1], [], []>} : vector<16x16xbf16>, vector<16x128xbf16>, vector<16x128xf32> -> vector<16x128xf32>
    %164 = arith.addf %140, %163 : vector<16x128xf32>
    %165 = vector.extract_strided_slice %9 {offsets = [0, 0, 96], sizes = [2, 8, 16], strides = [1, 1, 1]} : vector<2x8x128xbf16> to vector<2x8x16xbf16>
    %166 = vector.extract_strided_slice %11 {offsets = [0, 0, 96], sizes = [2, 16, 16], strides = [1, 1, 1]} : vector<2x16x256xbf16> to vector<2x16x16xbf16>
    %167 = vector.extract_strided_slice %11 {offsets = [0, 0, 224], sizes = [2, 16, 16], strides = [1, 1, 1]} : vector<2x16x256xbf16> to vector<2x16x16xbf16>
    %cst_55 = arith.constant dense<0.000000e+00> : vector<2x8x16xf32>
    %168 = tpu.matmul %165, %166, %cst_55 {dimension_numbers = #tpu.dot_dimension_numbers<[2], [2], [1], [1], [0, 0, 0, 1, 1, 1], [0], [0]>} : vector<2x8x16xbf16>, vector<2x16x16xbf16>, vector<2x8x16xf32> -> vector<2x8x16xf32>
    %cst_56 = arith.constant -9.99999979E+10 : f32
    %169 = vector.broadcast %cst_56 : f32 to vector<2x8x16xf32>
    %170 = arith.select %16, %169, %168 : vector<2x8x16xi1>, vector<2x8x16xf32>
    %cst_57 = arith.constant dense<0xFF800000> : vector<2x8xf32>
    %171 = vector.multi_reduction <maximumf>, %170, %cst_57 [2] : vector<2x8x16xf32> to vector<2x8xf32>
    %172 = vector.shape_cast %171 : vector<2x8xf32> to vector<2x8x1xf32>
    %173 = vector.broadcast %172 : vector<2x8x1xf32> to vector<2x8x16xf32>
    %174 = arith.subf %170, %173 : vector<2x8x16xf32>
    %175 = math.exp %174 : vector<2x8x16xf32>
    %cst_58 = arith.constant dense<0.000000e+00> : vector<2x8xf32>
    %176 = vector.multi_reduction <add>, %175, %cst_58 [2] : vector<2x8x16xf32> to vector<2x8xf32>
    %177 = vector.shape_cast %176 : vector<2x8xf32> to vector<2x8x1xf32>
    %178 = tpu.reciprocal %177 {approx = true} : vector<2x8x1xf32> -> vector<2x8x1xf32>
    %179 = vector.broadcast %178 : vector<2x8x1xf32> to vector<2x8x16xf32>
    %180 = arith.mulf %175, %179 : vector<2x8x16xf32>
    %181 = arith.mulf %180, %19 : vector<2x8x16xf32>
    %182 = arith.truncf %181 : vector<2x8x16xf32> to vector<2x8x16xbf16>
    %cst_59 = arith.constant dense<0.000000e+00> : vector<2x8x16xf32>
    %183 = tpu.matmul %182, %167, %cst_59 {dimension_numbers = #tpu.dot_dimension_numbers<[2], [1], [1], [2], [0, 0, 0, 1, 1, 2], [0], [0]>} : vector<2x8x16xbf16>, vector<2x16x16xbf16>, vector<2x8x16xf32> -> vector<2x8x16xf32>
    %184 = vector.shape_cast %183 : vector<2x8x16xf32> to vector<16x16xf32>
    %185 = arith.truncf %184 : vector<16x16xf32> to vector<16x16xbf16>
    %186 = vector.extract_strided_slice %12 {offsets = [96, 0], sizes = [16, 128], strides = [1, 1]} : vector<128x128xbf16> to vector<16x128xbf16>
    %cst_60 = arith.constant dense<0.000000e+00> : vector<16x128xf32>
    %187 = tpu.matmul %185, %186, %cst_60 {dimension_numbers = #tpu.dot_dimension_numbers<[1], [0], [0], [1], [0, 0, 1, 1], [], []>} : vector<16x16xbf16>, vector<16x128xbf16>, vector<16x128xf32> -> vector<16x128xf32>
    %188 = arith.addf %164, %187 : vector<16x128xf32>
    %189 = vector.extract_strided_slice %9 {offsets = [0, 0, 112], sizes = [2, 8, 16], strides = [1, 1, 1]} : vector<2x8x128xbf16> to vector<2x8x16xbf16>
    %190 = vector.extract_strided_slice %11 {offsets = [0, 0, 112], sizes = [2, 16, 16], strides = [1, 1, 1]} : vector<2x16x256xbf16> to vector<2x16x16xbf16>
    %191 = vector.extract_strided_slice %11 {offsets = [0, 0, 240], sizes = [2, 16, 16], strides = [1, 1, 1]} : vector<2x16x256xbf16> to vector<2x16x16xbf16>
    %cst_61 = arith.constant dense<0.000000e+00> : vector<2x8x16xf32>
    %192 = tpu.matmul %189, %190, %cst_61 {dimension_numbers = #tpu.dot_dimension_numbers<[2], [2], [1], [1], [0, 0, 0, 1, 1, 1], [0], [0]>} : vector<2x8x16xbf16>, vector<2x16x16xbf16>, vector<2x8x16xf32> -> vector<2x8x16xf32>
    %cst_62 = arith.constant -9.99999979E+10 : f32
    %193 = vector.broadcast %cst_62 : f32 to vector<2x8x16xf32>
    %194 = arith.select %16, %193, %192 : vector<2x8x16xi1>, vector<2x8x16xf32>
    %cst_63 = arith.constant dense<0xFF800000> : vector<2x8xf32>
    %195 = vector.multi_reduction <maximumf>, %194, %cst_63 [2] : vector<2x8x16xf32> to vector<2x8xf32>
    %196 = vector.shape_cast %195 : vector<2x8xf32> to vector<2x8x1xf32>
    %197 = vector.broadcast %196 : vector<2x8x1xf32> to vector<2x8x16xf32>
    %198 = arith.subf %194, %197 : vector<2x8x16xf32>
    %199 = math.exp %198 : vector<2x8x16xf32>
    %cst_64 = arith.constant dense<0.000000e+00> : vector<2x8xf32>
    %200 = vector.multi_reduction <add>, %199, %cst_64 [2] : vector<2x8x16xf32> to vector<2x8xf32>
    %201 = vector.shape_cast %200 : vector<2x8xf32> to vector<2x8x1xf32>
    %202 = tpu.reciprocal %201 {approx = true} : vector<2x8x1xf32> -> vector<2x8x1xf32>
    %203 = vector.broadcast %202 : vector<2x8x1xf32> to vector<2x8x16xf32>
    %204 = arith.mulf %199, %203 : vector<2x8x16xf32>
    %205 = arith.mulf %204, %19 : vector<2x8x16xf32>
    %206 = arith.truncf %205 : vector<2x8x16xf32> to vector<2x8x16xbf16>
    %cst_65 = arith.constant dense<0.000000e+00> : vector<2x8x16xf32>
    %207 = tpu.matmul %206, %191, %cst_65 {dimension_numbers = #tpu.dot_dimension_numbers<[2], [1], [1], [2], [0, 0, 0, 1, 1, 2], [0], [0]>} : vector<2x8x16xbf16>, vector<2x16x16xbf16>, vector<2x8x16xf32> -> vector<2x8x16xf32>
    %208 = vector.shape_cast %207 : vector<2x8x16xf32> to vector<16x16xf32>
    %209 = arith.truncf %208 : vector<16x16xf32> to vector<16x16xbf16>
    %210 = vector.extract_strided_slice %12 {offsets = [112, 0], sizes = [16, 128], strides = [1, 1]} : vector<128x128xbf16> to vector<16x128xbf16>
    %cst_66 = arith.constant dense<0.000000e+00> : vector<16x128xf32>
    %211 = tpu.matmul %209, %210, %cst_66 {dimension_numbers = #tpu.dot_dimension_numbers<[1], [0], [0], [1], [0, 0, 1, 1], [], []>} : vector<16x16xbf16>, vector<16x128xbf16>, vector<16x128xf32> -> vector<16x128xf32>
    %212 = arith.addf %188, %211 : vector<16x128xf32>
    %213 = vector.shape_cast %212 : vector<16x128xf32> to vector<2x8x128xf32>
    %c0_67 = arith.constant 0 : index
    %c0_68 = arith.constant 0 : index
    %c0_69 = arith.constant 0 : index
    %214 = vector.load %arg7[%c0_67, %c0_68, %c0_69] : memref<2x8x128xf32, #tpu.memory_space<vmem>>, vector<2x8x128xf32>
    tpu.vector_store %arg7[%c0_67, %c0_68, %c0_69], %213 {strides = array<i32>} : memref<2x8x128xf32, #tpu.memory_space<vmem>>, vector<2x8x128xf32>,
    return
  }
  func.func @transform_0(%arg0: i32) -> (i32, i32, i32) {
    %c0_i32 = arith.constant 0 : i32
    %c0_i32_0 = arith.constant 0 : i32
    %c0_i32_1 = arith.constant 0 : i32
    return %arg0, %c0_i32, %c0_i32_0 : i32, i32, i32
  }
  func.func @transform_1(%arg0: i32) -> (i32, i32, i32) {
    %c0_i32 = arith.constant 0 : i32
    %c0_i32_0 = arith.constant 0 : i32
    %c0_i32_1 = arith.constant 0 : i32
    return %arg0, %c0_i32, %c0_i32_0 : i32, i32, i32
  }
  func.func @transform_2(%arg0: i32) -> (i32, i32, i32) {
    %c0_i32 = arith.constant 0 : i32
    %c0_i32_0 = arith.constant 0 : i32
    %c0_i32_1 = arith.constant 0 : i32
    return %arg0, %c0_i32, %c0_i32_0 : i32, i32, i32
  }
  func.func @transform_3(%arg0: i32) -> (i32, i32) {
    %c0_i32 = arith.constant 0 : i32
    %c0_i32_0 = arith.constant 0 : i32
    %c0_i32_1 = arith.constant 0 : i32
    return %c0_i32, %c0_i32_0 : i32, i32
  }
  func.func @transform_4(%arg0: i32) -> (i32, i32) {
    %c0_i32 = arith.constant 0 : i32
    %c0_i32_0 = arith.constant 0 : i32
    %c0_i32_1 = arith.constant 0 : i32
    return %c0_i32, %c0_i32_0 : i32, i32
  }
  func.func @transform_5(%arg0: i32) -> (i32, i32) {
    %c0_i32 = arith.constant 0 : i32
    %c0_i32_0 = arith.constant 0 : i32
    %c0_i32_1 = arith.constant 0 : i32
    return %c0_i32, %c0_i32_0 : i32, i32
  }
  func.func @transform_6(%arg0: i32) -> (i32, i32, i32) {
    %c0_i32 = arith.constant 0 : i32
    %c0_i32_0 = arith.constant 0 : i32
    %c0_i32_1 = arith.constant 0 : i32
    return %arg0, %c0_i32, %c0_i32_0 : i32, i32, i32
  }
}

</mosaic_0001>

<bundles_post_ra>
// kernel: tpu_custom_call.1
= control target key start
LH: loop header
LB: loop body
LE: loop exit
PB: predicated region body
PF: predicated region fallthrough
CT: control target
= control target key end

     0   :  { %s4801_s0 = inlined_call_operand.hbm [shape: bf16[4,8,128], index: 0, kind: input, shape index: {}]   ;;  %s4802_s1 = inlined_call_operand.hbm [shape: bf16[4,16,128], index: 1, kind: input, shape index: {}]   ;;  %s4803_s2 = inlined_call_operand.hbm [shape: s8[4,8,16], index: 2, kind: input, shape index: {}]   ;;  %s4804_s3 = inlined_call_operand.hbm [shape: bf16[128,128], index: 3, kind: input, shape index: {}]   ;;  %s4805_s4 = inlined_call_operand.hbm [shape: bf16[128,256], index: 4, kind: input, shape index: {}]   ;;  %s4806_s5 = inlined_call_operand.hbm [shape: bf16[128,128], index: 5, kind: input, shape index: {}]   ;;  %s4807_s6 = inlined_call_operand.hbm [shape: f32[4,8,128], index: 6, kind: output, shape index: {}]  }
   0x1   :  { %4832 = sst [smem:[#allocation25_spill]] %s4802_s1 }
   0x2   :  { %4833 = sst [smem:[#allocation26_spill]] %s4804_s3 }
   0x3   :  { %4834 = sst [smem:[#allocation27_spill]] %s4807_s6 }
   0x4   :  { %11 = vsyncpa [#allocation3], 0 }
   0x5   :  { %13 = vsyncpa [#allocation3 + $0x1], 0 }
   0x6   :  { %14 = vsyncpa [#allocation6], 0 }
   0x7   :  { %16 = vsyncpa [#allocation6 + $0x1], 0 }
   0x8   :  { %17 = vsyncpa [#allocation9], 0 }
   0x9   :  { %18 = vsyncpa [#allocation12], 0 }
   0xa   :  { %19 = vsyncpa [#allocation4], 0 }
   0xb   :  { %21 = vsyncpa [#allocation4 + $0x1], 0  ;;  %s4059_s21 = smov 0   ;;  %s4061_s22 = smov 0  }
   0xc   :  { %s4063_s23 = smov 0   ;;  %s4065_s24 = smov 0  }
   0xd LB: > { %4835 = sst [smem:[#allocation19_spill]] %s3984_s21  ;;  %s4080_s25 = sadd.s32 4294967295, %s3996_s24   ;;  %s3996_s24 = sphi %s4065_s24, %s4873_s24   ;;  %s3992_s23 = sphi %s4063_s23, %s4875_s23   ;;  %s3988_s22 = sphi %s4061_s22, %s4877_s22   ;;  %s3984_s21 = sphi %s4059_s21, %s4876_s21  }
   0xe   : > { %4836 = sst [smem:[#allocation20_spill]] %s3992_s23  ;;  %s3041_s26 = sadd.s32 4294967294, %s3996_s24  }
   0xf   : > { %s4084_s27 = sadd.s32 1, %s3996_s24   ;;  %s34_s28 = sadd.s32 1, %s3992_s23 }
  0x10   : > { %4837 = sst [smem:[#allocation21_spill]] %s4084_s27  ;;  %s31_s29 = ssub.s32 %s3996_s24, %s4084_s27 }
  0x11   : > { %p41_p0 = scmp.ne.s32.totalorder %s3992_s23, %s3988_s22  ;;  %p32_p1 = scmp.eq.s32.totalorder %s31_s29, 0 }
  0x12   : > { %p42_p2 = scmp.eq.s32.totalorder %s3996_s24, 0  ;;  %p47_p3 = scmp.ne.s32.totalorder %s3988_s22, %s3984_s21 }
  0x13   : > { %p4808_p4 = scmp.eq.s32.totalorder %s4080_s25, 0  ;;  %p186_p7 = scmp.eq.s32.totalorder %s4080_s25, 1 }
  0x14   : > { %s4096_s30 = scalar_select %p32_p1, %s3992_s23, %s34_s28  }
  0x15   : > { %p4098_p5 = por %p42_p2, %p41_p0  ;;  %p4104_p6 = por %p4808_p4, %p47_p3 }
  0x16   : > { %4838 = sst [smem:[#allocation22_spill]] %s4096_s30  ;;  %p192_p8 = scmp.eq.s32.totalorder %s3041_s26, 1 }
  0x17   : > { %s4839_s7 = scalar_select %p4098_p5, 1, 0 }
  0x18   : > { %s4840_s8 = scalar_select %p4104_p6, 1, 0 }
  0x19   : > { %p3042_p9 = scmp.ge.s32.totalorder %s3996_s24, 1  ;;  %p199_p10 = scmp.lt.s32.totalorder %s3996_s24, 3 }
  0x1a   : > { %p4111_p11 = por %p186_p7, %p41_p0  ;;  %p4115_p12 = por %p192_p8, %p47_p3 }
  0x1b   : > { %p4119_p13 = pnand %p3042_p9, %p199_p10  ;;  %s3998_s12 = smov [#allocation8]  }
  0x1c   : > { %s4841_s9 = scalar_select %p4111_p11, 1, 0 }
  0x1d   : > { %s4843_s10 = scalar_select %p4115_p12, 1, 0 }
  0x1e   : > { %4842 = sst [smem:[#allocation23_spill]] %s4841_s9  ;;  %p3551_p1 = pneg %p4119_p13 }
  0x1f   : > { %4844 = sst [smem:[#allocation24_spill]] %s4843_s10  ;;  %s211_s13 = sshll.u32 %s3998_s12, 4  ;;  %s212_s13 = int_to_ptr.vmem [resolvable:$true] %s211_s13 }
  0x20   : > { %s4845_s11 = scalar_select %p4119_p13, 1, 0 }
  0x21   : > { %p4127_p2 = pnand %p3551_p1, %p4808_p4  ;;  %s4134_s15 = sand.u32 1, %s3992_s23  }
  0x22   : > { %s272_s16 = sand.u32 1, %s3996_s24   ;;  %s4847_s3 = sld [smem:[#allocation26_spill]] }
  0x23   : > { %s4846_s14 = scalar_select %p4127_p2, 1, 0 }
  0x24   : > { %p4145_p8 = pneg %p4127_p2 }
  0x26   : > { %s4848_s28 = scalar_select %p4145_p8, 1, 0 }
  0x28   : > { %s3744_s19 = scalar_lea.hbm %s4847_s3, 1024 }
  0x29   : > { %p3745_p7 = scmp.ne.s32.totalorder %s4847_s3, %s3744_s19  ;;  %p3751_p1 = scmp.lt.u32.totalorder %s3744_s19, %s4847_s3 }
  0x2b   : > { %p3747_p9 = pnand %p4145_p8, %p3745_p7 }
  0x2d   : > { %p3748_p10 = pneg %p3747_p9 }
  0x2f   : > { %p3753_p0 = pnand %p3751_p1, %p3748_p10 }
  0x31   : > { %3756 = shalt.err (!%p3753_p0)
}
  0x32   : > { %s3757_s17 = scalar_lea.vmem %s212_s13, 1024  ;;  %p3765_p11 = scmp.lt.s32.totalorder %s212_s13, %s212_s13 }
  0x33   : > { %p3758_p4 = scmp.ne.s32.totalorder %s212_s13, %s3757_s17  ;;  %p3766_p6 = scmp.lt.s32.totalorder %s3757_s17, %s3757_s17 }
  0x35   : > { %p3760_p3 = pnand %p3758_p4, %p4145_p8  ;;  %p3767_p13 = por %p3766_p6, %p3765_p11 }
  0x37   : > { %p3761_p12 = pneg %p3760_p3 }
  0x39   : > { %p3768_p5 = pnand %p3767_p13, %p3761_p12 }
  0x3b   : > { %3771 = shalt.err (!%p3768_p5)
}
  0x3c   : > { %s4815_s18 = smov 64   ;;  %s4824_s19 = smov 4  }
  0x3d   : > { %3554 = dma.hbm_to_vmem [thread:$0]  (!%p4127_p2), %s4847_s3, 1024, %s212_s13, [#allocation9], %s4815_s18, %s4815_s18, %s4824_s19  }
  0x3e   : > { %p4849_p4 = scmp.ne.s32.totalorder %s4839_s7, 0  ;;  %p4850_p0 = scmp.lt.s32.totalorder %s3996_s24, 2 }
  0x3f   : > { %s3050_s12 = sshll.u32 %s4134_s15, 4  ;;  %s3147_s17 = sshll.u32 %s3996_s24, 8 }
  0x40   : > { %p4168_p6 = pnand %p4850_p0, %p4849_p4  ;;  %s4852_s1 = sld [smem:[#allocation25_spill]] }
  0x41   : > { %s276_s20 = scalar_lea.vmem [#allocation5], %s3050_s12  ;;  %s4181_s7 = scalar_lea.sflag [#allocation6], %s272_s16 }
  0x42   : > { %s4851_s29 = scalar_select %p4168_p6, 1, 0 }
  0x43   : > { %s284_s13 = sshll.u32 %s276_s20, 4  ;;  %p4187_p11 = pneg %p4168_p6  ;;  %s4179_s13 = int_to_ptr.vmem [resolvable:$true] %s284_s13 }
  0x45   : > { %s4853_s18 = scalar_select %p4187_p11, 1, 0 }
  0x46   : > { %s4177_s27 = scalar_lea.hbm %s4852_s1, %s3147_s17  ;;  %s3777_s12 = scalar_lea.hbm %s4852_s1, 512 }
  0x47   : > { %s3772_s26 = scalar_lea.hbm %s4177_s27, 256  ;;  %p3778_p3 = scmp.lt.u32.totalorder %s4177_s27, %s4852_s1 }
  0x48   : > { %p3773_p5 = scmp.ne.s32.totalorder %s4177_s27, %s3772_s26  ;;  %p3779_p7 = scmp.lt.u32.totalorder %s3777_s12, %s3772_s26 }
  0x49   : > { %p3781_p10 = scmp.lt.u32.totalorder %s3772_s26, %s4177_s27 }
  0x4a   : > { %p3775_p12 = pnand %p4187_p11, %p3773_p5  ;;  %p3780_p9 = por %p3779_p7, %p3778_p3 }
  0x4c   : > { %p3776_p13 = pneg %p3775_p12  ;;  %p3782_p1 = por %p3781_p10, %p3780_p9 }
  0x4e   : > { %p3783_p4 = pnand %p3782_p1, %p3776_p13 }
  0x50   : > { %3786 = shalt.err (!%p3783_p4)
}
  0x51   : > { %s3787_s16 = scalar_lea.vmem %s4179_s13, 256  ;;  %s4001_s23 = smov [#allocation5]  }
  0x52   : > { %p3788_p0 = scmp.ne.s32.totalorder %s4179_s13, %s3787_s16  ;;  %s3792_s30 = sshll.u32 %s4001_s23, 4  ;;  %s3793_s30 = int_to_ptr.vmem [resolvable:$false] %s3792_s30 }
  0x53   : > { %s3794_s17 = scalar_lea.vmem %s3793_s30, 512  ;;  %p3795_p2 = scmp.lt.s32.totalorder %s4179_s13, %s3793_s30 }
  0x54   : > { %p3790_p5 = pnand %p3788_p0, %p4187_p11  ;;  %p3796_p8 = scmp.lt.s32.totalorder %s3794_s17, %s3787_s16 }
  0x56   : > { %p3791_p12 = pneg %p3790_p5  ;;  %p3797_p3 = por %p3796_p8, %p3795_p2 }
  0x58   : > { %p3798_p7 = pnand %p3797_p3, %p3791_p12 }
  0x5a   : > { %3801 = shalt.err (!%p3798_p7)
}
  0x5b   : > { %s4854_s26 = smov 64   ;;  %s4002_s12 = smov [#allocation10]  }
  0x5c   : > { %3567 = dma.hbm_to_vmem [thread:$0]  (!%p4168_p6), %s4177_s27, 256, %s4179_s13, %s4181_s7, %s4854_s26, %s4854_s26, %s4824_s19  }
  0x5d   : > { %s224_s20 = sshll.u32 %s4002_s12, 4  ;;  %s3802_s16 = scalar_lea.hbm %s4805_s4, 2048  ;;  %s225_s20 = int_to_ptr.vmem [resolvable:$true] %s224_s20 }
  0x5e   : > { %p3803_p2 = scmp.ne.s32.totalorder %s4805_s4, %s3802_s16  ;;  %p4855_p8 = scmp.ne.s32.totalorder %s4848_s28, 0 }
  0x5f   : > { %p3809_p10 = scmp.lt.u32.totalorder %s3802_s16, %s4805_s4 }
  0x60   : > { %p3805_p13 = pnand %p3803_p2, %p4855_p8 }
  0x62   : > { %p3806_p9 = pneg %p3805_p13 }
  0x64   : > { %p3811_p1 = pnand %p3809_p10, %p3806_p9 }
  0x66   : > { %3814 = shalt.err (!%p3811_p1)
}
  0x67   : > { %s3815_s27 = scalar_lea.vmem %s225_s20, 2048  ;;  %p3823_p12 = scmp.lt.s32.totalorder %s225_s20, %s225_s20 }
  0x68   : > { %p3816_p4 = scmp.ne.s32.totalorder %s225_s20, %s3815_s27  ;;  %p3824_p3 = scmp.lt.s32.totalorder %s3815_s27, %s3815_s27 }
  0x6a   : > { %p3818_p0 = pnand %p3816_p4, %p4855_p8  ;;  %p3825_p7 = por %p3824_p3, %p3823_p12 }
  0x6c   : > { %p3819_p5 = pneg %p3818_p0 }
  0x6e   : > { %p3826_p6 = pnand %p3825_p7, %p3819_p5 }
  0x70   : > { %3829 = shalt.err (!%p3826_p6)
}
  0x71   : > { %s4003_s1 = smov 128   ;;  %s4004_s13 = smov 8  }
  0x72   : > { %p4856_p2 = scmp.ne.s32.totalorder %s4846_s14, 0  ;;  %s4005_s12 = smov [#allocation11]  }
  0x73   : > { %s237_s23 = sshll.u32 %s4005_s12, 4  ;;  %s3047_s16 = sshll.u32 %s4134_s15, 3  ;;  %s238_s23 = int_to_ptr.vmem [resolvable:$true] %s237_s23 }
  0x74   : > { %3557 = dma.hbm_to_vmem [thread:$0]  (!%p4856_p2), %s4805_s4, 2048, %s225_s20, [#allocation9], %s4003_s1, %s4003_s1, %s4004_s13  }
  0x75   : > { %s3830_s27 = scalar_lea.hbm %s4806_s5, 1024 }
  0x76   : > { %p3831_p6 = scmp.ne.s32.totalorder %s4806_s5, %s3830_s27  ;;  %p3837_p10 = scmp.lt.u32.totalorder %s3830_s27, %s4806_s5 }
  0x78   : > { %p3833_p13 = pnand %p3831_p6, %p4855_p8 }
  0x7a   : > { %p3834_p9 = pneg %p3833_p13 }
  0x7c   : > { %p3839_p1 = pnand %p3837_p10, %p3834_p9 }
  0x7e   : > { %3842 = shalt.err (!%p3839_p1)
}
  0x7f   : > { %s3843_s20 = scalar_lea.vmem %s238_s23, 1024  ;;  %p3851_p12 = scmp.lt.s32.totalorder %s238_s23, %s238_s23 }
  0x80   : > { %p3844_p4 = scmp.ne.s32.totalorder %s238_s23, %s3843_s20  ;;  %p3852_p3 = scmp.lt.s32.totalorder %s3843_s20, %s3843_s20 }
  0x82   : > { %p3846_p0 = pnand %p3844_p4, %p4855_p8  ;;  %p3853_p7 = por %p3852_p3, %p3851_p12 }
  0x84   : > { %p3847_p5 = pneg %p3846_p0 }
  0x86   : > { %p3854_p11 = pnand %p3853_p7, %p3847_p5 }
  0x88   : > { %3857 = shalt.err (!%p3854_p11)
}
  0x89   : > { %s4857_s21 = smov 4   ;;  %s3145_s28 = sshll.u32 %s3996_s24, 7 }
  0x8a   : > { %3560 = dma.hbm_to_vmem [thread:$0]  (!%p4856_p2), %s4806_s5, 1024, %s238_s23, [#allocation12], %s4854_s26, %s4854_s26, %s4857_s21  }
  0x8b   : > { %s255_s19 = scalar_lea.vmem [#allocation2], %s3047_s16  ;;  %s4258_s10 = scalar_lea.hbm %s4801_s0, %s3145_s28 }
  0x8c   : > { %s262_s1 = sshll.u32 %s255_s19, 4  ;;  %s252_s14 = scalar_lea.sflag [#allocation3], %s4134_s15  ;;  %s4260_s1 = int_to_ptr.vmem [resolvable:$true] %s262_s1 }
  0x8d   : > { %s3858_s12 = scalar_lea.hbm %s4258_s10, 128  ;;  %p4858_p8 = scmp.ne.s32.totalorder %s4853_s18, 0 }
  0x8e   : > { %p3859_p11 = scmp.ne.s32.totalorder %s4258_s10, %s3858_s12  ;;  %s3863_s30 = scalar_lea.hbm %s4801_s0, 256 }
  0x8f   : > { %p3864_p13 = scmp.lt.u32.totalorder %s4258_s10, %s4801_s0  ;;  %p3865_p9 = scmp.lt.u32.totalorder %s3863_s30, %s3858_s12 }
  0x90   : > { %p3861_p6 = pnand %p3859_p11, %p4858_p8  ;;  %p3867_p1 = scmp.lt.u32.totalorder %s3858_s12, %s4258_s10 }
  0x91   : > { %p3866_p10 = por %p3865_p9, %p3864_p13 }
  0x92   : > { %p3862_p2 = pneg %p3861_p6 }
  0x93   : > { %p3868_p4 = por %p3867_p1, %p3866_p10 }
  0x95   : > { %p3869_p0 = pnand %p3868_p4, %p3862_p2 }
  0x97   : > { %3872 = shalt.err (!%p3869_p0)
}
  0x98   : > { %s3873_s20 = scalar_lea.vmem %s4260_s1, 128  ;;  %s4006_s6 = smov [#allocation2]  }
  0x99   : > { %p3874_p5 = scmp.ne.s32.totalorder %s4260_s1, %s3873_s20  ;;  %s3878_s9 = sshll.u32 %s4006_s6, 4  ;;  %s3879_s9 = int_to_ptr.vmem [resolvable:$false] %s3878_s9 }
  0x9a   : > { %s3880_s28 = scalar_lea.vmem %s3879_s9, 256  ;;  %p3881_p7 = scmp.lt.s32.totalorder %s4260_s1, %s3879_s9 }
  0x9b   : > { %p3876_p12 = pnand %p3874_p5, %p4858_p8  ;;  %p3882_p11 = scmp.lt.s32.totalorder %s3880_s28, %s3873_s20 }
  0x9d   : > { %p3877_p3 = pneg %p3876_p12  ;;  %p3883_p6 = por %p3882_p11, %p3881_p7 }
  0x9f   : > { %p3884_p13 = pnand %p3883_p6, %p3877_p3 }
  0xa1   : > { %3887 = shalt.err (!%p3884_p13)
}
  0xa2   : > { %p4859_p2 = scmp.ne.s32.totalorder %s4851_s29, 0  ;;  %s3054_s19 = sshll.u32 %s4134_s15, 2 }
  0xa3   : > { %s3148_s13 = sshll.u32 %s3996_s24, 6  ;;  %s298_s16 = scalar_lea.vmem [#allocation7], %s3054_s19 }
  0xa4   : > { %3564 = dma.hbm_to_vmem [thread:$0]  (!%p4859_p2), %s4258_s10, 128, %s4260_s1, %s252_s14, %s4854_s26, %s4854_s26, %s4857_s21  }
  0xa5   : > { %s4294_s23 = scalar_lea.hbm %s4803_s2, %s3148_s13  ;;  %s305_s30 = sshll.u32 %s298_s16, 4  ;;  %s4296_s30 = int_to_ptr.vmem [resolvable:$true] %s305_s30 }
  0xa6   : > { %s3888_s17 = scalar_lea.hbm %s4294_s23, 64  ;;  %s3893_s21 = scalar_lea.hbm %s4803_s2, 128 }
  0xa7   : > { %p3889_p9 = scmp.ne.s32.totalorder %s4294_s23, %s3888_s17  ;;  %p3894_p4 = scmp.lt.u32.totalorder %s4294_s23, %s4803_s2 }
  0xa8   : > { %p3895_p0 = scmp.lt.u32.totalorder %s3893_s21, %s3888_s17  ;;  %p3897_p12 = scmp.lt.u32.totalorder %s3888_s17, %s4294_s23 }
  0xa9   : > { %p3891_p10 = pnand %p3889_p9, %p4858_p8 }
  0xaa   : > { %p3896_p5 = por %p3895_p0, %p3894_p4 }
  0xab   : > { %p3892_p1 = pneg %p3891_p10 }
  0xac   : > { %p3898_p3 = por %p3897_p12, %p3896_p5 }
  0xae   : > { %p3899_p7 = pnand %p3898_p3, %p3892_p1 }
  0xb0   : > { %3902 = shalt.err (!%p3899_p7)
}
  0xb1   : > { %s3903_s14 = scalar_lea.vmem %s4296_s30, 64  ;;  %s4007_s27 = smov [#allocation7]  }
  0xb2   : > { %p3904_p11 = scmp.ne.s32.totalorder %s4296_s30, %s3903_s14  ;;  %s3908_s20 = sshll.u32 %s4007_s27, 4  ;;  %s3909_s20 = int_to_ptr.vmem [resolvable:$false] %s3908_s20 }
  0xb3   : > { %s3910_s6 = scalar_lea.vmem %s3909_s20, 128  ;;  %p3911_p9 = scmp.lt.s32.totalorder %s4296_s30, %s3909_s20 }
  0xb4   : > { %p3906_p6 = pnand %p3904_p11, %p4858_p8  ;;  %p3912_p10 = scmp.lt.s32.totalorder %s3910_s6, %s3903_s14 }
  0xb6   : > { %p3907_p13 = pneg %p3906_p6  ;;  %p3913_p4 = por %p3912_p10, %p3911_p9 }
  0xb8   : > { %p3914_p0 = pnand %p3913_p4, %p3907_p13 }
  0xba   : > { %3917 = shalt.err (!%p3914_p0)
}
  0xbb   : > { %s4008_s9 = smov 32   ;;  %s4009_s28 = smov 2  }
  0xbc   : > { %3570 = dma.hbm_to_vmem [thread:$0]  (!%p4859_p2), %s4294_s23, 64, %s4296_s30, %s4181_s7, %s4008_s9, %s4008_s9, %s4009_s28  }
  0xbd   : > { %p4860_p8 = scmp.ne.s32.totalorder %s4845_s11, 0 }
  0xbe   : > { %s4323_s18 = sand.u32 (!%p4860_p8), 1, %s3988_s22   ;;  %p4861_p1 = scmp.ne.s32.totalorder (!%p4860_p8), %s4840_s8, 0 }
  0xbf   : > { %317 = sbr.rel (%p4860_p8) target bundleno = 5459 (0x1553), region = 44  ;;  %s3058_s19 = sshll.u32 (!%p4860_p8), %s4323_s18, 3 }
  0xc0   : > { %s320_s13 = scalar_lea.sflag (!%p4860_p8), [#allocation3], %s4323_s18  ;;  %s4327_s3 = scalar_lea.vmem (!%p4860_p8), [#allocation2], %s3058_s19 }
  0xc6   : > { %3963 = dma.done.wait (%p4861_p1), %s320_s13, 128  }
  0xc7   : > { %3965 = vsyncadd (%p4861_p1), %s320_s13, 4294967168  ;;  %s328_s11 = sand.u32 1, %s4080_s25   ;;  %s3059_s29 = sshll.u32 %s4323_s18, 4 }
  0xc8   : > { %s329_s7 = scalar_lea.sflag [#allocation6], %s328_s11  ;;  %s4337_s12 = scalar_lea.vmem [#allocation5], %s3059_s29 }
  0xc9   : > { %3967 = dma.done.wait (%p4861_p1), %s329_s7, 320  }
  0xca   : > { %3969 = vsyncadd (%p4861_p1), %s329_s7, 4294966976  ;;  %s3060_s23 = sshll.u32 %s4323_s18, 2  ;;  %p4862_p2 = scmp.eq.s32.totalorder %s4080_s25, 0 }
  0xcb   : > { %s4344_s16 = scalar_lea.vmem [#allocation7], %s3060_s23 }
  0xcc   : > { %3971 = dma.done.wait (%p4862_p2), [#allocation9], 3072   ;;  %p4863_p5 = pmov %p4862_p2 }
  0xcd   : > { %p4864_p12 = pmov %p4862_p2 }
  0xce   : > { %3973 = vsyncadd (%p4863_p5), [#allocation9], 4294964224 }
  0xcf   : > { %3975 = dma.done.wait (%p4864_p12), [#allocation12], 1024   ;;  %p4865_p3 = pmov %p4862_p2 }
  0xd0   : > { %v4010_v0 = vmov 0.0   ;;  %v4011_v1 = vmov 0   ;;  %vm4012_vm0 = vmmov 0   ;;  %v3637_v2 = vld [vmem:[#allocation10 + $0x4] ss:$8 sps:$4 sm:$0xff]   ;;  %v3653_v11 = vld [vmem:[#allocation8 + $0x10] sm:$0xff]  }
  0xd1   : > { %3977 = vsyncadd (%p4865_p3), [#allocation12], 4294966272  ;;  %3243 = vmatprep.subr.bf16.mxu0 %v4010_v0  ;;  %654 = vmatprep.mubr.bf16.mxu1 %v4011_v1  ;;  %v3639_v3 = vld [vmem:[#allocation10] ss:$8 sps:$4 sm:$0xff]   ;;  %v3640_v4 = vld [vmem:[#allocation10 + $0x14] ss:$8 sps:$4 sm:$0xff]  }
  0xd2   : > { %3259 = vmatprep.mubr.msk.bf16.mxu0 %vm4012_vm0, %v4010_v0  ;;  %622 = vmatprep.subr.bf16.mxu1 %v3637_v2  ;;  %v3642_v5 = vld [vmem:[#allocation10 + $0x10] ss:$8 sps:$4 sm:$0xff]   ;;  %v3643_v6 = vld [vmem:[#allocation10 + $0x24] ss:$8 sps:$4 sm:$0xff]   ;;  %v3646_v9 = vld [vmem:[#allocation10 + $0x20] ss:$8 sps:$4 sm:$0xff]  }
  0xd3   : > { %623 = vmatpush1.bf16.msra.mxu1 %v3639_v3  ;;  %v3645_v7 = vld [vmem:[#allocation8] sm:$0xff]   ;;  %v3649_v8 = vld [vmem:[#allocation8 + $0x8] sm:$0xff]   ;;  %v3647_v10 = vld [vmem:[#allocation10 + $0x34] ss:$8 sps:$4 sm:$0xff]   ;;  %vm707_vm1 = vcmask 130048   ;;  %s4013_s8 = smov 112  }
  0xd4   : > { %624 = vmatprep.subr.bf16.mxu1 %v3640_v4  ;;  %3244 = vmatpush3.bf16.msra.mxu0 %v3645_v7  ;;  %v3650_v12 = vld [vmem:[#allocation10 + $0x30] ss:$8 sps:$4 sm:$0xff]   ;;  %v3651_v13 = vld [vmem:[#allocation10 + $0x44] ss:$8 sps:$4 sm:$0xff]   ;;  %v3654_v15 = vld [vmem:[#allocation10 + $0x40] ss:$8 sps:$4 sm:$0xff]  }
  0xd5   : > { %3245 = vmatprep.subr.bf16.mxu0 %v4010_v0  ;;  %v3657_v14 = vld [vmem:[#allocation8 + $0x18] sm:$0xff]   ;;  %v3661_v17 = vld [vmem:[#allocation8 + $0x20] sm:$0xff]   ;;  %v3665_v21 = vld [vmem:[#allocation8 + $0x28] sm:$0xff]   ;;  %s4015_s30 = smov 96   ;;  %s4016_s17 = smov 80  }
  0xd6   : > { %v3655_v16 = vld [vmem:[#allocation10 + $0x54] ss:$8 sps:$4 sm:$0xff]   ;;  %v3658_v18 = vld [vmem:[#allocation10 + $0x50] ss:$8 sps:$4 sm:$0xff]   ;;  %v3659_v19 = vld [vmem:[#allocation10 + $0x64] ss:$8 sps:$4 sm:$0xff]  }
  0xd7   : > { %625 = vmatpush1.bf16.msra.mxu1 %v3642_v5  ;;  %v3662_v20 = vld [vmem:[#allocation10 + $0x60] ss:$8 sps:$4 sm:$0xff]   ;;  %v3663_v22 = vld [vmem:[#allocation10 + $0x74] ss:$8 sps:$4 sm:$0xff]   ;;  %v3666_v24 = vld [vmem:[#allocation10 + $0x70] ss:$8 sps:$4 sm:$0xff]  }
  0xd8   : > { %626 = vmatprep.subr.bf16.mxu1 %v3643_v6  ;;  %3246 = vmatpush3.bf16.msra.mxu0 %v3649_v8  ;;  %v3668_v23 = vld [vmem:[#allocation8 + $0x30] sm:$0xff]   ;;  %v3667_v25 = vld [vmem:[%s4337_s12] sm:$0xff]   ;;  %s4017_s15 = smov 64   ;;  %s4018_s26 = smov 48  }
  0xd9   : > { %3247 = vmatprep.subr.bf16.mxu0 %v4010_v0  ;;  %v3669_v26 = vld [vmem:[#allocation8 + $0x38] sm:$0xff]   ;;  %v3670_v27 = vld [vmem:[%s4327_s3] sm:$0xff]   ;;  %s4019_s21 = smov 32   ;;  %s4020_s1 = smov 16  }
  0xda   : > { %v3671_v28 = vld [vmem:[%s4337_s12 + $0x8] sm:$0xff]   ;;  %v3151_v49 = vld [vmem:[%s4344_s16] sm:$0xf]   ;;  %s4866_s10 = sld [smem:[#allocation23_spill]]  ;;  %s391_s14 = scalar_lea.vmem [#allocation13], %s3059_s29 }
  0xdb   : > { %627 = vmatpush1.bf16.msra.mxu1 %v3646_v9  ;;  %v3153_v50 = vunpack.c.1.s8 %v3151_v49  ;;  %v3152_v2 = vunpack.c.0.s8 %v3151_v49  ;;  %s2896_s27 = sshll.u32 %s391_s14, 4  ;;  %s3149_s20 = sshll.u32 %s4080_s25, 8  ;;  %s4752_s27 = int_to_ptr.vmem [resolvable:$true] %s2896_s27 }
  0xdc   : > { %628 = vmatprep.subr.bf16.mxu1 %v3647_v10  ;;  %3248 = vmatpush3.bf16.msra.mxu0 %v3653_v11  ;;  %s4867_s28 = sld [smem:[#allocation27_spill]]  ;;  %s2883_s13 = scalar_lea.sflag [#allocation4], %s4323_s18 }
  0xdd   : > { %3249 = vmatprep.subr.bf16.mxu0 %v4010_v0  ;;  %v4408_v54 = vcvt.s32.f32 %v3153_v50  ;;  %v4414_v3 = vcvt.s32.f32 %v3152_v2  ;;  %s3918_s3 = scalar_lea.vmem %s4752_s27, 256  ;;  %s4021_s25 = smov [#allocation13]  }
  0xde   : > { %p3919_p7 = scmp.ne.s32.totalorder %s4752_s27, %s3918_s3  ;;  %s3922_s11 = sshll.u32 %s4021_s25, 4  ;;  %s3923_s11 = int_to_ptr.vmem [resolvable:$false] %s3922_s11 }
  0xdf   : > { %629 = vmatpush1.bf16.msra.mxu1 %v3650_v12  ;;  %vm704_vm2 = vcmp.gt.f32.partialorder %v4408_v54, 0.0  ;;  %vm703_vm3 = vcmp.gt.f32.partialorder %v4414_v3, 0.0  ;;  %s3924_s29 = scalar_lea.vmem %s3923_s11, 512  ;;  %p3925_p9 = scmp.lt.s32.totalorder %s4752_s27, %s3923_s11 }
  0xe0   : > { %630 = vmatprep.subr.bf16.mxu1 %v3651_v13  ;;  %3250 = vmatpush3.bf16.msra.mxu0 %v3657_v14  ;;  %v4014_v13 = vmov 1.0   ;;  %p4868_p11 = scmp.ne.s32.totalorder %s4866_s10, 0  ;;  %p3926_p10 = scmp.lt.s32.totalorder %s3924_s29, %s3918_s3 }
  0xe1   : > { %3251 = vmatprep.subr.bf16.mxu0 %v4010_v0  ;;  %v4427_v14 = vsel %vm704_vm2, 0.0, %v4014_v13 }
  0xe2   : > { %s4757_s19 = scalar_lea.hbm %s4867_s28, %s3149_s20  ;;  %p3920_p6 = pnand %p3919_p7, %p4868_p11 }
  0xe3   : > { %631 = vmatpush1.bf16.msra.mxu1 %v3654_v15  ;;  %p3927_p4 = por %p3926_p10, %p3925_p9 }
  0xe4   : > { %632 = vmatprep.subr.bf16.mxu1 %v3655_v16  ;;  %3252 = vmatpush3.bf16.msra.mxu0 %v3661_v17  ;;  %p3921_p13 = pneg %p3920_p6 }
  0xe5   : > { %3253 = vmatprep.subr.bf16.mxu0 %v4010_v0 }
  0xe6   : > { %p3928_p0 = pnand %p3927_p4, %p3921_p13 }
  0xe7   : > { %633 = vmatpush1.bf16.msra.mxu1 %v3658_v18 }
  0xe8   : > { %634 = vmatprep.subr.bf16.mxu1 %v3659_v19  ;;  %3254 = vmatpush3.bf16.msra.mxu0 %v3665_v21 }
  0xe9   : > { %3255 = vmatprep.subr.bf16.mxu0 %v4010_v0 }
  0xeb   : > { %635 = vmatpush1.bf16.msra.mxu1 %v3662_v20 }
  0xec   : > { %636 = vmatprep.subr.bf16.mxu1 %v3663_v22  ;;  %3256 = vmatpush3.bf16.msra.mxu0 %v3668_v23 }
  0xed   : > { %3257 = vmatprep.subr.bf16.mxu0 %v4010_v0 }
  0xef   : > { %637 = vmatpush1.bf16.msra.mxu1 %v3666_v24 }
  0xf0   : > { %3275 = vmatprep.subr.bf16.mxu1 %v4010_v0  ;;  %3258 = vmatpush3.bf16.msra.mxu0 %v3669_v26  ;;  %v4444_v26 = vsel %vm703_vm3, 0.0, %v4014_v13 }
  0xf1   : > { %3263 = vmatprep.subr.bf16.mxu0 %v4010_v0 }
  0xf2   : > { %655 = vmatmul.mubr.bf16.vlgmr.msra.gmra.mrb[0].mxu1 %v3667_v25 }
  0xf3   : > { %664 = vmatprep.mubr.bf16.mxu1 %v4011_v1  ;;  %3260 = vmatmul.mubr.bf16.vlgmr.msra.gmra.mrb[0].mxu0 %v3670_v27 }
  0xf4   : > { %3265 = vmatprep.mubr.msk.bf16.mxu0 %vm4012_vm0, %v4010_v0 }
  0xfa   : > { %665 = vmatmul.mubr.bf16.gmra.mrb[4].mxu1 %v3671_v28 }
  0xfb   : > { %3277 = vmatprep.mubr.msk.bf16.mxu1 %vm4012_vm0, %v4010_v0 }
 0x1c5   : > { %v656_v29 = vpop.f32.mrb[0].mxu1 }
 0x1c6   : > { %v658_v30 = vpop.f32.mrb[1].mxu1  ;;  %v507_v34 = vpop.f32.mrb[0].mxu0 }
 0x1c7   : > { %v660_v31 = vpop.f32.mrb[2].mxu1  ;;  %v3261_v36 = vpop.f32.mrb[1].mxu0  ;;  %v4382_v41 = vpack.c.bf16 %v507_v34, %v507_v34 }
 0x1c8   : > { %v4373_v32 = vpack.c.bf16 %v660_v31, %v656_v29  ;;  %v662_v33 = vpop.f32.mrb[3].mxu1  ;;  %v510_v38 = vpop.f32.mrb[2].mxu0 }
 0x1c9   : > { %v4375_v35 = vpack.c.bf16 %v662_v33, %v658_v30  ;;  %v3262_v39 = vpop.f32.mrb[3].mxu0  ;;  %v4396_v48 = vpack.c.bf16 %v510_v38, %v510_v38 }
 0x1ca   : > { %v712_v37 = vsel %vm707_vm1, %v4373_v32, 0 }
 0x1cb   : > { %3264 = vmatpush3.bf16.xpose.msra.mxu0 %v712_v37  ;;  %3276 = vmatpush3.bf16.msra.mxu1 %v4375_v35 }
 0x1cc   : > { %3269 = vmatprep.subr.bf16.mxu0 %v4010_v0  ;;  %3287 = vmatprep.subr.bf16.mxu1 %v4010_v0 }
 0x1cd   : > { %v666_v40 = vpop.f32.mrb[4].mxu1 }
 0x1ce   : > { %v668_v42 = vpop.f32.mrb[5].mxu1 }
 0x1cf   : > { %v670_v43 = vpop.f32.mrb[6].mxu1 }
 0x1d0   : > { %v4384_v44 = vpack.c.bf16 %v670_v43, %v666_v40  ;;  %v672_v45 = vpop.f32.mrb[7].mxu1 }
 0x1d1   : > { %v4386_v46 = vpack.c.bf16 %v672_v45, %v668_v42 }
 0x1d2   : > { %971 = vrot.lane.b32.xlu1 %v4384_v44, %s4013_s8  ;;  %3266 = vmatmul.mubr.msk.bf16.vlgmr.msra.gmra.mrb[4].mxu0 %vm707_vm1, %v4382_v41  ;;  %v758_v47 = vsel %vm707_vm1, %v4384_v44, 0 }
 0x1d3   : > { %3270 = vmatpush3.bf16.xpose.msra.mxu0 %v758_v47  ;;  %3271 = vmatprep.mubr.msk.bf16.mxu0 %vm4012_vm0, %v4010_v0 }
 0x1d4   : > { %3281 = vmatprep.subr.bf16.mxu0 %v4010_v0 }
 0x1d6   : > { %968 = vrot.lane.b32.xlu1 %v4396_v48, %s4013_s8 }
 0x1da   : > { %3272 = vmatmul.mubr.msk.bf16.vlgmr.msra.gmra.mrb[8].mxu0 %vm707_vm1, %v4396_v48 }
 0x1db   : > { %3282 = vmatpush3.bf16.msra.mxu0 %v4386_v46  ;;  %3283 = vmatprep.mubr.msk.bf16.mxu0 %vm4012_vm0, %v4010_v0 }
 0x1dc   : > { %3293 = vmatprep.subr.bf16.mxu0 %v4010_v0 }
 0x244   : > { %v972_v17 = vpop.permute.xlu1 %971 }
 0x245   : > { %v977_v19 = vsel %vm707_vm1, %v972_v17, 0 }
 0x248   : > { %v969_v22 = vpop.permute.xlu1 %968 }
 0x2a5   : > { %v748_v51 = vpop.f32.mrb[4].mxu0 }
 0x2a6   : > { %v3267_v52 = vpop.f32.mrb[5].mxu0  ;;  %v800_v6 = vsel %vm703_vm3, -1e+11, %v748_v51 }
 0x2a7   : > { %v751_v53 = vpop.f32.mrb[6].mxu0  ;;  %v802_v7 = vsel %vm707_vm1, %v800_v6, -inf }
 0x2a8   : > { %v3268_v55 = vpop.f32.mrb[7].mxu0 }
 0x2ad   : > { %v794_v56 = vpop.f32.mrb[8].mxu0 }
 0x2ae   : > { %v801_v57 = vsel %vm704_vm2, -1e+11, %v794_v56  ;;  %v3273_v58 = vpop.f32.mrb[9].mxu0 }
 0x2af   : > { %v797_v59 = vpop.f32.mrb[10].mxu0  ;;  %v805_v60 = vsel %vm707_vm1, %v801_v57, -inf }
 0x2b0   : > { %806 = vmax.xlane.f32.xlu0 %v805_v60  ;;  %v3274_v61 = vpop.f32.mrb[11].mxu0 }
 0x33d   : > { %v807_v62 = vpop.xlane.xlu0 %806 }
 0x33e   : > { %v809_v63 = vsub.f32 %v801_v57, %v807_v62 }
 0x340   : > { %v812_v1 = vmul.f32 1.442695, %v809_v63 }
 0x342   : > { %3680 = vpow2.f32 %v812_v1 }
 0x34c   : > { %v3681_v4 = vpop.eup %3680 }
 0x34d   : > { %v817_v5 = vsel %vm707_vm1, %v3681_v4, 0.0 }
 0x34e   : > { %818 = vadd.xlane.f32.xlu0 %v817_v5 }
 0x352   : > { %803 = vmax.xlane.f32.xlu0 %v802_v7 }
 0x368   : > { %919 = vrot.lane.b32.xlu0 %v4373_v32, %s4013_s8 }
 0x36c   : > { %916 = vrot.lane.b32.xlu0 %v4382_v41, %s4013_s8 }
 0x3db   : > { %v819_v8 = vpop.xlane.xlu0 %818 }
 0x3dc   : > { %3682 = vrcp.f32 %v819_v8 }
 0x3df   : > { %v804_v9 = vpop.xlane.xlu0 %803 }
 0x3e0   : > { %v808_v10 = vsub.f32 %v800_v6, %v804_v9 }
 0x3e2   : > { %v810_v11 = vmul.f32 1.442695, %v808_v10 }
 0x3e3   : > { %v920_v29 = vpop.permute.xlu0 %919 }
 0x3e4   : > { %3684 = vpow2.f32 %v810_v11  ;;  %v925_v31 = vsel %vm707_vm1, %v920_v29, 0 }
 0x3e6   : > { %v3683_v12 = vpop.eup %3682 }
 0x3e7   : > { %v823_v15 = vmul.f32 %v3683_v12, %v3681_v4  ;;  %v917_v33 = vpop.permute.xlu0 %916 }
 0x3e9   : > { %v825_v16 = vmul.f32 %v823_v15, %v4427_v14 }
 0x3eb   : > { %v827_v18 = vpack.c.bf16 %v825_v16, %v825_v16 }
 0x3ed   : > { %3284 = vmatmul.mubr.msk.bf16.vlgmr.msra.gmra.mrb[12].mxu0 %vm707_vm1, %v827_v18 }
 0x3ee   : > { %v3685_v20 = vpop.eup %3684  ;;  %3294 = vmatpush3.bf16.xpose.msra.mxu0 %v977_v19  ;;  %3295 = vmatprep.mubr.msk.bf16.mxu0 %vm4012_vm0, %v4010_v0 }
 0x3ef   : > { %v814_v21 = vsel %vm707_vm1, %v3685_v20, 0.0  ;;  %3305 = vmatprep.subr.bf16.mxu0 %v4010_v0 }
 0x3f0   : > { %815 = vadd.xlane.f32.xlu1 %v814_v21 }
 0x3f5   : > { %3296 = vmatmul.mubr.msk.bf16.vlgmr.msra.gmra.mrb[16].mxu0 %vm707_vm1, %v969_v22 }
 0x3f6   : > { %3307 = vmatprep.mubr.msk.bf16.mxu0 %vm4012_vm0, %v4010_v0 }
 0x401   : > { %1095 = vrot.lane.b32.xlu1 %v4386_v46, %s4013_s8 }
 0x47d   : > { %v816_v23 = vpop.xlane.xlu1 %815 }
 0x47e   : > { %3686 = vrcp.f32 %v816_v23 }
 0x481   : > { %v1096_v24 = vpop.permute.xlu1 %1095 }
 0x482   : > { %3306 = vmatpush3.bf16.msra.mxu0 %v1096_v24 }
 0x483   : > { %3323 = vmatprep.subr.bf16.mxu0 %v4010_v0 }
 0x488   : > { %v3687_v25 = vpop.eup %3686 }
 0x489   : > { %v822_v27 = vmul.f32 %v3687_v25, %v3685_v20 }
 0x48b   : > { %v824_v28 = vmul.f32 %v822_v27, %v4444_v26 }
 0x48d   : > { %v826_v30 = vpack.c.bf16 %v824_v28, %v824_v28 }
 0x48f   : > { %3278 = vmatmul.mubr.msk.bf16.vlgmr.msra.gmra.mrb[8].mxu1 %vm707_vm1, %v826_v30 }
 0x490   : > { %3288 = vmatpush3.bf16.xpose.msra.mxu1 %v925_v31  ;;  %3289 = vmatprep.mubr.msk.bf16.mxu1 %vm4012_vm0, %v4010_v0 }
 0x491   : > { %3299 = vmatprep.subr.bf16.mxu1 %v4010_v0 }
 0x497   : > { %3290 = vmatmul.mubr.msk.bf16.vlgmr.msra.gmra.mrb[12].mxu1 %vm707_vm1, %v917_v33 }
 0x498   : > { %3301 = vmatprep.mubr.msk.bf16.mxu1 %vm4012_vm0, %v4010_v0 }
 0x4c0   : > { %v4455_v34 = vpop.f32.mrb[12].mxu0 }
 0x4c1   : > { %v3285_v36 = vpop.f32.mrb[13].mxu0 }
 0x4c2   : > { %v911_v37 = vpop.f32.mrb[14].mxu0 }
 0x4c3   : > { %v3286_v38 = vpop.f32.mrb[15].mxu0 }
 0x4c8   : > { %v1013_v39 = vpop.f32.mrb[16].mxu0 }
 0x4c9   : > { %v1020_v40 = vsel %vm704_vm2, -1e+11, %v1013_v39  ;;  %v3297_v42 = vpop.f32.mrb[17].mxu0 }
 0x4ca   : > { %v1016_v43 = vpop.f32.mrb[18].mxu0  ;;  %v1024_v45 = vsel %vm707_vm1, %v1020_v40, -inf }
 0x4cb   : > { %1025 = vmax.xlane.f32.xlu0 %v1024_v45  ;;  %v3298_v47 = vpop.f32.mrb[19].mxu0 }
 0x4e1   : > { %1242 = vrot.lane.b32.xlu0 %v4382_v41, %s4015_s30 }
 0x558   : > { %v1026_v49 = vpop.xlane.xlu0 %1025 }
 0x559   : > { %v1028_v50 = vsub.f32 %v1020_v40, %v1026_v49 }
 0x55b   : > { %v1031_v51 = vmul.f32 1.442695, %v1028_v50 }
 0x55c   : > { %v1243_v12 = vpop.permute.xlu0 %1242 }
 0x55d   : > { %3688 = vpow2.f32 %v1031_v51  ;;  %v3672_v51 = vld [vmem:[#allocation11 + $0x8] sm:$0xff]  }
 0x562   : > { %v4462_v52 = vpop.f32.mrb[8].mxu1 }
 0x563   : > { %v914_v53 = vpack.c.bf16 %v4455_v34, %v4462_v52  ;;  %v3279_v55 = vpop.f32.mrb[9].mxu1 }
 0x564   : > { %v868_v56 = vpop.f32.mrb[10].mxu1 }
 0x565   : > { %v3280_v57 = vpop.f32.mrb[11].mxu1 }
 0x567   : > { %v3689_v58 = vpop.eup %3688 }
 0x568   : > { %v1036_v59 = vsel %vm707_vm1, %v3689_v58, 0.0 }
 0x569   : > { %1037 = vadd.xlane.f32.xlu1 %v1036_v59 }
 0x56a   : > { %v961_v60 = vpop.f32.mrb[12].mxu1 }
 0x56b   : > { %v3291_v61 = vpop.f32.mrb[13].mxu1  ;;  %v1019_v1 = vsel %vm703_vm3, -1e+11, %v961_v60 }
 0x56c   : > { %v964_v62 = vpop.f32.mrb[14].mxu1  ;;  %v1021_v2 = vsel %vm707_vm1, %v1019_v1, -inf }
 0x56d   : > { %v3292_v63 = vpop.f32.mrb[15].mxu1 }
 0x57a   : > { %1244 = vrot.lane.b32.xlu1 %v4373_v32, %s4015_s30 }
 0x57e   : > { %1294 = vrot.lane.b32.xlu1 %v4384_v44, %s4015_s30 }
 0x582   : > { %1292 = vrot.lane.b32.xlu1 %v4396_v48, %s4015_s30 }
 0x5a6   : > { %1022 = vmax.xlane.f32.xlu1 %v1021_v2 }
 0x5b7   : > { %1048 = vrot.lane.b32.xlu1 %v4375_v35, %s4013_s8 }
 0x5f6   : > { %v1038_v4 = vpop.xlane.xlu1 %1037 }
 0x5f7   : > { %3690 = vrcp.f32 %v1038_v4  ;;  %v3673_v4 = vld [vmem:[#allocation11] sm:$0xff]  }
 0x5fa   : > { %v1245_v8 = vpop.permute.xlu1 %1244 }
 0x5fb   : > { %v1250_v10 = vsel %vm707_vm1, %v1245_v8, 0 }
 0x5fe   : > { %v1295_v11 = vpop.permute.xlu1 %1294 }
 0x5ff   : > { %v1300_v13 = vsel %vm707_vm1, %v1295_v11, 0 }
 0x601   : > { %v3691_v5 = vpop.eup %3690 }
 0x602   : > { %v1042_v6 = vmul.f32 %v3691_v5, %v3689_v58  ;;  %v1293_v15 = vpop.permute.xlu1 %1292 }
 0x604   : > { %v1044_v7 = vmul.f32 %v1042_v6, %v4427_v14 }
 0x606   : > { %v1046_v9 = vpack.c.bf16 %v1044_v7, %v1044_v7 }
 0x608   : > { %3308 = vmatmul.mubr.msk.bf16.vlgmr.msra.gmra.mrb[20].mxu0 %vm707_vm1, %v1046_v9 }
 0x609   : > { %3324 = vmatpush3.bf16.xpose.msra.mxu0 %v1250_v10  ;;  %3325 = vmatprep.mubr.msk.bf16.mxu0 %vm4012_vm0, %v4010_v0 }
 0x60a   : > { %3329 = vmatprep.subr.bf16.mxu0 %v4010_v0 }
 0x610   : > { %3326 = vmatmul.mubr.msk.bf16.vlgmr.msra.gmra.mrb[24].mxu0 %vm707_vm1, %v1243_v12 }
 0x611   : > { %3330 = vmatpush3.bf16.xpose.msra.mxu0 %v1300_v13  ;;  %3331 = vmatprep.mubr.msk.bf16.mxu0 %vm4012_vm0, %v4010_v0 }
 0x612   : > { %3341 = vmatprep.subr.bf16.mxu0 %v4010_v0 }
 0x618   : > { %3332 = vmatmul.mubr.msk.bf16.vlgmr.msra.gmra.mrb[28].mxu0 %vm707_vm1, %v1293_v15 }
 0x619   : > { %3343 = vmatprep.mubr.msk.bf16.mxu0 %vm4012_vm0, %v4010_v0 }
 0x633   : > { %v1023_v16 = vpop.xlane.xlu1 %1022 }
 0x634   : > { %v1027_v17 = vsub.f32 %v1019_v1, %v1023_v16 }
 0x636   : > { %v1029_v18 = vmul.f32 1.442695, %v1027_v17 }
 0x637   : > { %v1049_v19 = vpop.permute.xlu1 %1048 }
 0x638   : > { %3692 = vpow2.f32 %v1029_v18  ;;  %3300 = vmatpush3.bf16.msra.mxu1 %v1049_v19 }
 0x639   : > { %3311 = vmatprep.subr.bf16.mxu1 %v4010_v0 }
 0x642   : > { %v3693_v20 = vpop.eup %3692 }
 0x643   : > { %v1033_v21 = vsel %vm707_vm1, %v3693_v20, 0.0 }
 0x644   : > { %1034 = vadd.xlane.f32.xlu0 %v1033_v21 }
 0x6d1   : > { %v1035_v22 = vpop.xlane.xlu0 %1034 }
 0x6d2   : > { %3694 = vrcp.f32 %v1035_v22  ;;  %v3674_v22 = vld [vmem:[#allocation11 + $0x10] sm:$0xff]  }
 0x6db   : > { %v1135_v23 = vpop.f32.mrb[20].mxu0 }
 0x6dc   : > { %v3695_v24 = vpop.eup %3694  ;;  %v3309_v25 = vpop.f32.mrb[21].mxu0 }
 0x6dd   : > { %v1041_v27 = vmul.f32 %v3695_v24, %v3693_v20  ;;  %v1138_v28 = vpop.f32.mrb[22].mxu0 }
 0x6de   : > { %v3310_v29 = vpop.f32.mrb[23].mxu0 }
 0x6df   : > { %v1043_v30 = vmul.f32 %v1041_v27, %v4444_v26 }
 0x6e1   : > { %v1045_v31 = vpack.c.bf16 %v1043_v30, %v1043_v30 }
 0x6e3   : > { %3302 = vmatmul.mubr.msk.bf16.vlgmr.msra.gmra.mrb[16].mxu1 %vm707_vm1, %v1045_v31  ;;  %v1286_v33 = vpop.f32.mrb[24].mxu0 }
 0x6e4   : > { %v1342_v36 = vsel %vm703_vm3, -1e+11, %v1286_v33  ;;  %v3327_v37 = vpop.f32.mrb[25].mxu0  ;;  %3313 = vmatprep.mubr.msk.bf16.mxu1 %vm4012_vm0, %v4010_v0  ;;  %3312 = vmatpush3.bf16.msra.mxu1 %v3672_v51 }
 0x6e5   : > { %v1289_v38 = vpop.f32.mrb[26].mxu0  ;;  %v1344_v39 = vsel %vm707_vm1, %v1342_v36, -inf  ;;  %3317 = vmatprep.subr.bf16.mxu1 %v4010_v0 }
 0x6e6   : > { %1345 = vmax.xlane.f32.xlu0 %v1344_v39  ;;  %v3328_v40 = vpop.f32.mrb[27].mxu0 }
 0x6eb   : > { %v1336_v42 = vpop.f32.mrb[28].mxu0 }
 0x6ec   : > { %v1343_v43 = vsel %vm704_vm2, -1e+11, %v1336_v42  ;;  %v3333_v45 = vpop.f32.mrb[29].mxu0 }
 0x6ed   : > { %v1339_v47 = vpop.f32.mrb[30].mxu0  ;;  %v1347_v49 = vsel %vm707_vm1, %v1343_v43, -inf }
 0x6ee   : > { %1348 = vmax.xlane.f32.xlu0 %v1347_v49  ;;  %v3334_v50 = vpop.f32.mrb[31].mxu0 }
 0x773   : > { %v1346_v55 = vpop.xlane.xlu0 %1345 }
 0x774   : > { %v1350_v56 = vsub.f32 %v1342_v36, %v1346_v55 }
 0x776   : > { %v1352_v57 = vmul.f32 1.442695, %v1350_v56 }
 0x778   : > { %3696 = vpow2.f32 %v1352_v57 }
 0x77b   : > { %v1349_v58 = vpop.xlane.xlu0 %1348 }
 0x77c   : > { %v1351_v59 = vsub.f32 %v1343_v43, %v1349_v58 }
 0x77e   : > { %v1354_v60 = vmul.f32 1.442695, %v1351_v59 }
 0x780   : > { %3698 = vpow2.f32 %v1354_v60 }
 0x782   : > { %v3697_v61 = vpop.eup %3696 }
 0x783   : > { %v1356_v62 = vsel %vm707_vm1, %v3697_v61, 0.0 }
 0x784   : > { %1357 = vadd.xlane.f32.xlu0 %v1356_v62 }
 0x78a   : > { %v3699_v63 = vpop.eup %3698 }
 0x78b   : > { %v1359_v1 = vsel %vm707_vm1, %v3699_v63, 0.0 }
 0x78c   : > { %1360 = vadd.xlane.f32.xlu1 %v1359_v1 }
 0x79a   : > { %1370 = vrot.lane.b32.xlu0 %v4375_v35, %s4015_s30 }
 0x79d   : > { %1567 = vrot.lane.b32.xlu1 %v4384_v44, %s4016_s17 }
 0x79e   : > { %1416 = vrot.lane.b32.xlu0 %v4386_v46, %s4015_s30 }
 0x7a2   : > { %1517 = vrot.lane.b32.xlu0 %v4373_v32, %s4016_s17 }
 0x7a6   : > { %1515 = vrot.lane.b32.xlu0 %v4382_v41, %s4016_s17 }
 0x7aa   : > { %1565 = vrot.lane.b32.xlu0 %v4396_v48, %s4016_s17 }
 0x7b6   : > { %v1088_v2 = vpop.f32.mrb[16].mxu1 }
 0x7b7   : > { %v1141_v5 = vpack.c.bf16 %v1135_v23, %v1088_v2  ;;  %v3303_v6 = vpop.f32.mrb[17].mxu1 }
 0x7b8   : > { %v1091_v7 = vpop.f32.mrb[18].mxu1 }
 0x7b9   : > { %v3304_v8 = vpop.f32.mrb[19].mxu1  ;;  %3314 = vmatmul.mubr.msk.bf16.vlgmr.msra.gmra.mrb[20].mxu1 %vm707_vm1, %v1141_v5 }
 0x7ba   : > { %3318 = vmatpush3.bf16.msra.mxu1 %v3673_v4  ;;  %3319 = vmatprep.mubr.msk.bf16.mxu1 %vm4012_vm0, %v4010_v0 }
 0x7bb   : > { %3335 = vmatprep.subr.bf16.mxu1 %v4010_v0 }
 0x7c5   : > { %3320 = vmatmul.mubr.msk.bf16.vlgmr.msra.gmra.mrb[20].mxu1 %vm707_vm1, %v914_v53 }
 0x7c6   : > { %3337 = vmatprep.mubr.msk.bf16.mxu1 %vm4012_vm0, %v4010_v0 }
 0x811   : > { %v1358_v9 = vpop.xlane.xlu0 %1357 }
 0x812   : > { %3700 = vrcp.f32 %v1358_v9 }
 0x815   : > { %v1371_v10 = vpop.permute.xlu0 %1370 }
 0x816   : > { %3336 = vmatpush3.bf16.msra.mxu1 %v1371_v10 }
 0x817   : > { %3347 = vmatprep.subr.bf16.mxu1 %v4010_v0 }
 0x819   : > { %v1361_v11 = vpop.xlane.xlu1 %1360  ;;  %v1417_v12 = vpop.permute.xlu0 %1416 }
 0x81a   : > { %3702 = vrcp.f32 %v1361_v11  ;;  %3342 = vmatpush3.bf16.msra.mxu0 %v1417_v12 }
 0x81b   : > { %3353 = vmatprep.subr.bf16.mxu0 %v4010_v0 }
 0x81c   : > { %v3701_v13 = vpop.eup %3700 }
 0x81d   : > { %v1364_v15 = vmul.f32 %v3701_v13, %v3697_v61  ;;  %v1518_v18 = vpop.permute.xlu0 %1517  ;;  %v1568_v28 = vpop.permute.xlu1 %1567 }
 0x81e   : > { %v1523_v20 = vsel %vm707_vm1, %v1518_v18, 0  ;;  %v1573_v36 = vsel %vm707_vm1, %v1568_v28, 0 }
 0x81f   : > { %v1366_v34 = vmul.f32 %v1364_v15, %v4444_v26 }
 0x821   : > { %v1368_v52 = vpack.c.bf16 %v1366_v34, %v1366_v34  ;;  %v1516_v21 = vpop.permute.xlu0 %1515 }
 0x823   : > { %3338 = vmatmul.mubr.msk.bf16.vlgmr.msra.gmra.mrb[24].mxu1 %vm707_vm1, %v1368_v52 }
 0x824   : > { %v3703_v53 = vpop.eup %3702  ;;  %3349 = vmatprep.mubr.msk.bf16.mxu1 %vm4012_vm0, %v4010_v0  ;;  %3348 = vmatpush3.bf16.msra.mxu1 %v3674_v22 }
 0x825   : > { %v1365_v16 = vmul.f32 %v3703_v53, %v3699_v63  ;;  %3359 = vmatprep.subr.bf16.mxu1 %v4010_v0  ;;  %v1566_v42 = vpop.permute.xlu0 %1565 }
 0x827   : > { %v1367_v17 = vmul.f32 %v1365_v16, %v4427_v14 }
 0x829   : > { %v1369_v19 = vpack.c.bf16 %v1367_v17, %v1367_v17 }
 0x82b   : > { %3344 = vmatmul.mubr.msk.bf16.vlgmr.msra.gmra.mrb[32].mxu0 %vm707_vm1, %v1369_v19 }
 0x82c   : > { %3354 = vmatpush3.bf16.xpose.msra.mxu0 %v1523_v20  ;;  %3355 = vmatprep.mubr.msk.bf16.mxu0 %vm4012_vm0, %v4010_v0 }
 0x82d   : > { %3365 = vmatprep.subr.bf16.mxu0 %v4010_v0 }
 0x833   : > { %3356 = vmatmul.mubr.msk.bf16.vlgmr.msra.gmra.mrb[36].mxu0 %vm707_vm1, %v1516_v21 }
 0x834   : > { %3367 = vmatprep.mubr.msk.bf16.mxu0 %vm4012_vm0, %v4010_v0 }
 0x8f6   : > { %v1410_v23 = vpop.f32.mrb[24].mxu1 }
 0x8f7   : > { %v3339_v24 = vpop.f32.mrb[25].mxu1 }
 0x8f8   : > { %v1413_v25 = vpop.f32.mrb[26].mxu1 }
 0x8f9   : > { %v3340_v27 = vpop.f32.mrb[27].mxu1 }
 0x8fe   : > { %v1456_v29 = vpop.f32.mrb[32].mxu0 }
 0x8ff   : > { %v1462_v30 = vpack.c.bf16 %v1456_v29, %v1410_v23  ;;  %v3345_v31 = vpop.f32.mrb[33].mxu0 }
 0x900   : > { %v1459_v33 = vpop.f32.mrb[34].mxu0 }
 0x901   : > { %v3346_v37 = vpop.f32.mrb[35].mxu0  ;;  %3350 = vmatmul.mubr.msk.bf16.vlgmr.msra.gmra.mrb[20].mxu1 %vm707_vm1, %v1462_v30 }
 0x902   : > { %3360 = vmatpush3.bf16.xpose.msra.mxu1 %v1573_v36  ;;  %3361 = vmatprep.mubr.msk.bf16.mxu1 %vm4012_vm0, %v4010_v0 }
 0x903   : > { %3371 = vmatprep.subr.bf16.mxu1 %v4010_v0 }
 0x906   : > { %v1559_v38 = vpop.f32.mrb[36].mxu0 }
 0x907   : > { %v1615_v39 = vsel %vm703_vm3, -1e+11, %v1559_v38  ;;  %v3357_v40 = vpop.f32.mrb[37].mxu0 }
 0x908   : > { %v1562_v43 = vpop.f32.mrb[38].mxu0  ;;  %v1617_v45 = vsel %vm707_vm1, %v1615_v39, -inf }
 0x909   : > { %3362 = vmatmul.mubr.msk.bf16.vlgmr.msra.gmra.mrb[28].mxu1 %vm707_vm1, %v1566_v42  ;;  %1618 = vmax.xlane.f32.xlu0 %v1617_v45  ;;  %v3358_v47 = vpop.f32.mrb[39].mxu0  ;;  %v3675_v45 = vld [vmem:[#allocation11 + $0x18] sm:$0xff]  }
 0x90a   : > { %3373 = vmatprep.mubr.msk.bf16.mxu1 %vm4012_vm0, %v4010_v0 }
 0x91f   : > { %1643 = vrot.lane.b32.xlu0 %v4375_v35, %s4016_s17 }
 0x923   : > { %1788 = vrot.lane.b32.xlu0 %v4382_v41, %s4017_s15 }
 0x927   : > { %1840 = vrot.lane.b32.xlu0 %v4384_v44, %s4017_s15 }
 0x92b   : > { %1838 = vrot.lane.b32.xlu0 %v4396_v48, %s4017_s15 }
 0x996   : > { %v1619_v49 = vpop.xlane.xlu0 %1618 }
 0x997   : > { %v1623_v50 = vsub.f32 %v1615_v39, %v1619_v49 }
 0x999   : > { %v1625_v51 = vmul.f32 1.442695, %v1623_v50 }
 0x99a   : > { %v1644_v55 = vpop.permute.xlu0 %1643 }
 0x99b   : > { %3704 = vpow2.f32 %v1625_v51  ;;  %3366 = vmatpush3.bf16.msra.mxu0 %v1644_v55 }
 0x99c   : > { %3383 = vmatprep.subr.bf16.mxu0 %v4010_v0 }
 0x99e   : > { %v1789_v8 = vpop.permute.xlu0 %1788 }
 0x9a2   : > { %v1841_v10 = vpop.permute.xlu0 %1840 }
 0x9a3   : > { %v1846_v11 = vsel %vm707_vm1, %v1841_v10, 0 }
 0x9a5   : > { %v3705_v56 = vpop.eup %3704 }
 0x9a6   : > { %v1629_v57 = vsel %vm707_vm1, %v3705_v56, 0.0  ;;  %v1839_v12 = vpop.permute.xlu0 %1838 }
 0x9a7   : > { %1630 = vadd.xlane.f32.xlu1 %v1629_v57 }
 0x9b8   : > { %1790 = vrot.lane.b32.xlu1 %v4373_v32, %s4017_s15 }
 0x9dc   : > { %v1609_v58 = vpop.f32.mrb[28].mxu1 }
 0x9dd   : > { %v1616_v59 = vsel %vm704_vm2, -1e+11, %v1609_v58  ;;  %v3363_v60 = vpop.f32.mrb[29].mxu1 }
 0x9de   : > { %v1612_v61 = vpop.f32.mrb[30].mxu1  ;;  %v1620_v62 = vsel %vm707_vm1, %v1616_v59, -inf }
 0x9df   : > { %v3364_v63 = vpop.f32.mrb[31].mxu1  ;;  %1621 = vmax.xlane.f32.xlu1 %v1620_v62 }
 0xa34   : > { %v1631_v1 = vpop.xlane.xlu1 %1630 }
 0xa35   : > { %3706 = vrcp.f32 %v1631_v1 }
 0xa38   : > { %v1791_v6 = vpop.permute.xlu1 %1790 }
 0xa39   : > { %v1796_v9 = vsel %vm707_vm1, %v1791_v6, 0 }
 0xa3f   : > { %v3707_v2 = vpop.eup %3706 }
 0xa40   : > { %v1637_v4 = vmul.f32 %v3707_v2, %v3705_v56 }
 0xa42   : > { %v1639_v5 = vmul.f32 %v1637_v4, %v4444_v26 }
 0xa44   : > { %v1641_v7 = vpack.c.bf16 %v1639_v5, %v1639_v5 }
 0xa46   : > { %3368 = vmatmul.mubr.msk.bf16.vlgmr.msra.gmra.mrb[40].mxu0 %vm707_vm1, %v1641_v7 }
 0xa47   : > { %3384 = vmatpush3.bf16.xpose.msra.mxu0 %v1796_v9  ;;  %3385 = vmatprep.mubr.msk.bf16.mxu0 %vm4012_vm0, %v4010_v0 }
 0xa48   : > { %3389 = vmatprep.subr.bf16.mxu0 %v4010_v0 }
 0xa4e   : > { %3386 = vmatmul.mubr.msk.bf16.vlgmr.msra.gmra.mrb[44].mxu0 %vm707_vm1, %v1789_v8 }
 0xa4f   : > { %3390 = vmatpush3.bf16.xpose.msra.mxu0 %v1846_v11  ;;  %3391 = vmatprep.mubr.msk.bf16.mxu0 %vm4012_vm0, %v4010_v0 }
 0xa50   : > { %3401 = vmatprep.subr.bf16.mxu0 %v4010_v0 }
 0xa56   : > { %3392 = vmatmul.mubr.msk.bf16.vlgmr.msra.gmra.mrb[48].mxu0 %vm707_vm1, %v1839_v12 }
 0xa57   : > { %3403 = vmatprep.mubr.msk.bf16.mxu0 %vm4012_vm0, %v4010_v0 }
 0xa6c   : > { %v1622_v13 = vpop.xlane.xlu1 %1621 }
 0xa6d   : > { %v1624_v15 = vsub.f32 %v1616_v59, %v1622_v13 }
 0xa6f   : > { %v1627_v34 = vmul.f32 1.442695, %v1624_v15 }
 0xa71   : > { %3708 = vpow2.f32 %v1627_v34 }
 0xa7b   : > { %v3709_v52 = vpop.eup %3708 }
 0xa7c   : > { %v1632_v53 = vsel %vm707_vm1, %v3709_v52, 0.0 }
 0xa7d   : > { %1633 = vadd.xlane.f32.xlu0 %v1632_v53 }
 0xa93   : > { %1689 = vrot.lane.b32.xlu0 %v4386_v46, %s4016_s17 }
 0xa97   : > { %1962 = vrot.lane.b32.xlu0 %v4386_v46, %s4017_s15 }
 0xa9b   : > { %2063 = vrot.lane.b32.xlu0 %v4373_v32, %s4018_s26 }
 0xa9f   : > { %2061 = vrot.lane.b32.xlu0 %v4382_v41, %s4018_s26 }
 0xaa3   : > { %2113 = vrot.lane.b32.xlu0 %v4384_v44, %s4018_s26 }
 0xb0a   : > { %v1634_v16 = vpop.xlane.xlu0 %1633 }
 0xb0b   : > { %3710 = vrcp.f32 %v1634_v16  ;;  %v3676_v16 = vld [vmem:[#allocation11 + $0x20] sm:$0xff]  }
 0xb0e   : > { %v1690_v17 = vpop.permute.xlu0 %1689 }
 0xb0f   : > { %3372 = vmatpush3.bf16.msra.mxu1 %v1690_v17 }
 0xb10   : > { %3377 = vmatprep.subr.bf16.mxu1 %v4010_v0 }
 0xb12   : > { %v1963_v18 = vpop.permute.xlu0 %1962 }
 0xb13   : > { %3402 = vmatpush3.bf16.msra.mxu0 %v1963_v18 }
 0xb14   : > { %3413 = vmatprep.subr.bf16.mxu0 %v4010_v0 }
 0xb15   : > { %v3711_v19 = vpop.eup %3710 }
 0xb16   : > { %v1638_v20 = vmul.f32 %v3711_v19, %v3709_v52  ;;  %v2064_v15 = vpop.permute.xlu0 %2063 }
 0xb17   : > { %v2069_v52 = vsel %vm707_vm1, %v2064_v15, 0 }
 0xb18   : > { %v1640_v21 = vmul.f32 %v1638_v20, %v4427_v14 }
 0xb19   : > { %v1683_v22 = vpop.f32.mrb[40].mxu0 }
 0xb1a   : > { %v3369_v23 = vpop.f32.mrb[41].mxu0  ;;  %v1642_v24 = vpack.c.bf16 %v1640_v21, %v1640_v21  ;;  %v2062_v53 = vpop.permute.xlu0 %2061 }
 0xb1b   : > { %v1686_v25 = vpop.f32.mrb[42].mxu0 }
 0xb1c   : > { %v3370_v27 = vpop.f32.mrb[43].mxu0  ;;  %3374 = vmatmul.mubr.msk.bf16.vlgmr.msra.gmra.mrb[32].mxu1 %vm707_vm1, %v1642_v24 }
 0xb1d   : > { %3379 = vmatprep.mubr.msk.bf16.mxu1 %vm4012_vm0, %v4010_v0  ;;  %3378 = vmatpush3.bf16.msra.mxu1 %v3675_v45 }
 0xb1e   : > { %3395 = vmatprep.subr.bf16.mxu1 %v4010_v0  ;;  %v2114_v21 = vpop.permute.xlu0 %2113 }
 0xb1f   : > { %v2119_v27 = vsel %vm707_vm1, %v2114_v21, 0 }
 0xb21   : > { %v1832_v28 = vpop.f32.mrb[44].mxu0 }
 0xb22   : > { %v1888_v29 = vsel %vm703_vm3, -1e+11, %v1832_v28  ;;  %v3387_v30 = vpop.f32.mrb[45].mxu0 }
 0xb23   : > { %v1835_v31 = vpop.f32.mrb[46].mxu0  ;;  %v1890_v33 = vsel %vm707_vm1, %v1888_v29, -inf }
 0xb24   : > { %1891 = vmax.xlane.f32.xlu1 %v1890_v33  ;;  %v3388_v36 = vpop.f32.mrb[47].mxu0 }
 0xb29   : > { %v1882_v37 = vpop.f32.mrb[48].mxu0 }
 0xb2a   : > { %v1889_v38 = vsel %vm704_vm2, -1e+11, %v1882_v37  ;;  %v3393_v39 = vpop.f32.mrb[49].mxu0 }
 0xb2b   : > { %v1885_v40 = vpop.f32.mrb[50].mxu0  ;;  %v1893_v42 = vsel %vm707_vm1, %v1889_v38, -inf }
 0xb2c   : > { %1894 = vmax.xlane.f32.xlu1 %v1893_v42  ;;  %v3394_v43 = vpop.f32.mrb[51].mxu0 }
 0xbb1   : > { %v1892_v47 = vpop.xlane.xlu1 %1891 }
 0xbb2   : > { %v1896_v49 = vsub.f32 %v1888_v29, %v1892_v47 }
 0xbb4   : > { %v1898_v50 = vmul.f32 1.442695, %v1896_v49 }
 0xbb6   : > { %3712 = vpow2.f32 %v1898_v50 }
 0xbb9   : > { %v1895_v51 = vpop.xlane.xlu1 %1894 }
 0xbba   : > { %v1897_v55 = vsub.f32 %v1889_v38, %v1895_v51 }
 0xbbc   : > { %v1900_v56 = vmul.f32 1.442695, %v1897_v55 }
 0xbbe   : > { %3714 = vpow2.f32 %v1900_v56 }
 0xbc0   : > { %v3713_v57 = vpop.eup %3712 }
 0xbc1   : > { %v1902_v58 = vsel %vm707_vm1, %v3713_v57, 0.0 }
 0xbc2   : > { %1903 = vadd.xlane.f32.xlu1 %v1902_v58 }
 0xbc8   : > { %v3715_v59 = vpop.eup %3714 }
 0xbc9   : > { %v1905_v60 = vsel %vm707_vm1, %v3715_v59, 0.0 }
 0xbca   : > { %1906 = vadd.xlane.f32.xlu1 %v1905_v60 }
 0xbdb   : > { %1916 = vrot.lane.b32.xlu1 %v4375_v35, %s4017_s15 }
 0xbdf   : > { %2111 = vrot.lane.b32.xlu1 %v4396_v48, %s4018_s26 }
 0xbef   : > { %v1729_v61 = vpop.f32.mrb[32].mxu1 }
 0xbf0   : > { %v1735_v62 = vpack.c.bf16 %v1729_v61, %v1683_v22  ;;  %v3375_v63 = vpop.f32.mrb[33].mxu1 }
 0xbf1   : > { %v1732_v1 = vpop.f32.mrb[34].mxu1 }
 0xbf2   : > { %v3376_v2 = vpop.f32.mrb[35].mxu1  ;;  %3380 = vmatmul.mubr.msk.bf16.vlgmr.msra.gmra.mrb[20].mxu1 %vm707_vm1, %v1735_v62 }
 0xbf3   : > { %3397 = vmatprep.mubr.msk.bf16.mxu1 %vm4012_vm0, %v4010_v0 }
 0xc4f   : > { %v1904_v4 = vpop.xlane.xlu1 %1903 }
 0xc50   : > { %3716 = vrcp.f32 %v1904_v4 }
 0xc57   : > { %v1907_v5 = vpop.xlane.xlu1 %1906 }
 0xc58   : > { %3718 = vrcp.f32 %v1907_v5 }
 0xc5a   : > { %v3717_v6 = vpop.eup %3716 }
 0xc5b   : > { %v1910_v7 = vmul.f32 %v3717_v6, %v3713_v57  ;;  %v1917_v8 = vpop.permute.xlu1 %1916 }
 0xc5c   : > { %3396 = vmatpush3.bf16.msra.mxu1 %v1917_v8 }
 0xc5d   : > { %v1912_v9 = vmul.f32 %v1910_v7, %v4444_v26  ;;  %3407 = vmatprep.subr.bf16.mxu1 %v4010_v0 }
 0xc5f   : > { %v1914_v10 = vpack.c.bf16 %v1912_v9, %v1912_v9  ;;  %v2112_v33 = vpop.permute.xlu1 %2111 }
 0xc61   : > { %3398 = vmatmul.mubr.msk.bf16.vlgmr.msra.gmra.mrb[36].mxu1 %vm707_vm1, %v1914_v10 }
 0xc62   : > { %v3719_v11 = vpop.eup %3718  ;;  %3409 = vmatprep.mubr.msk.bf16.mxu1 %vm4012_vm0, %v4010_v0  ;;  %3408 = vmatpush3.bf16.msra.mxu1 %v3676_v16 }
 0xc63   : > { %v1911_v12 = vmul.f32 %v3719_v11, %v3715_v59  ;;  %3419 = vmatprep.subr.bf16.mxu1 %v4010_v0 }
 0xc65   : > { %v1913_v13 = vmul.f32 %v1911_v12, %v4427_v14 }
 0xc67   : > { %v1915_v34 = vpack.c.bf16 %v1913_v13, %v1913_v13 }
 0xc69   : > { %3404 = vmatmul.mubr.msk.bf16.vlgmr.msra.gmra.mrb[52].mxu0 %vm707_vm1, %v1915_v34 }
 0xc6a   : > { %3414 = vmatpush3.bf16.xpose.msra.mxu0 %v2069_v52  ;;  %3415 = vmatprep.mubr.msk.bf16.mxu0 %vm4012_vm0, %v4010_v0 }
 0xc6b   : > { %3425 = vmatprep.subr.bf16.mxu0 %v4010_v0 }
 0xc71   : > { %3416 = vmatmul.mubr.msk.bf16.vlgmr.msra.gmra.mrb[56].mxu0 %vm707_vm1, %v2062_v53 }
 0xc72   : > { %3427 = vmatprep.mubr.msk.bf16.mxu0 %vm4012_vm0, %v4010_v0 }
 0xd34   : > { %v1956_v17 = vpop.f32.mrb[36].mxu1 }
 0xd35   : > { %v3399_v18 = vpop.f32.mrb[37].mxu1 }
 0xd36   : > { %v1959_v19 = vpop.f32.mrb[38].mxu1 }
 0xd37   : > { %v3400_v20 = vpop.f32.mrb[39].mxu1 }
 0xd3c   : > { %v2002_v22 = vpop.f32.mrb[52].mxu0 }
 0xd3d   : > { %v2008_v23 = vpack.c.bf16 %v2002_v22, %v1956_v17  ;;  %v3405_v24 = vpop.f32.mrb[53].mxu0 }
 0xd3e   : > { %v2005_v25 = vpop.f32.mrb[54].mxu0 }
 0xd3f   : > { %v3406_v28 = vpop.f32.mrb[55].mxu0  ;;  %3410 = vmatmul.mubr.msk.bf16.vlgmr.msra.gmra.mrb[20].mxu1 %vm707_vm1, %v2008_v23 }
 0xd40   : > { %3420 = vmatpush3.bf16.xpose.msra.mxu1 %v2119_v27  ;;  %3421 = vmatprep.mubr.msk.bf16.mxu1 %vm4012_vm0, %v4010_v0 }
 0xd41   : > { %3431 = vmatprep.subr.bf16.mxu1 %v4010_v0 }
 0xd44   : > { %v2105_v29 = vpop.f32.mrb[56].mxu0 }
 0xd45   : > { %v2161_v30 = vsel %vm703_vm3, -1e+11, %v2105_v29  ;;  %v3417_v31 = vpop.f32.mrb[57].mxu0 }
 0xd46   : > { %v2108_v36 = vpop.f32.mrb[58].mxu0  ;;  %v2163_v37 = vsel %vm707_vm1, %v2161_v30, -inf  ;;  %v3677_v31 = vld [vmem:[#allocation11 + $0x28] sm:$0xff]  }
 0xd47   : > { %3422 = vmatmul.mubr.msk.bf16.vlgmr.msra.gmra.mrb[40].mxu1 %vm707_vm1, %v2112_v33  ;;  %2164 = vmax.xlane.f32.xlu0 %v2163_v37  ;;  %v3418_v38 = vpop.f32.mrb[59].mxu0 }
 0xd48   : > { %3433 = vmatprep.mubr.msk.bf16.mxu1 %vm4012_vm0, %v4010_v0 }
 0xd5d   : > { %2189 = vrot.lane.b32.xlu0 %v4375_v35, %s4018_s26 }
 0xd61   : > { %2334 = vrot.lane.b32.xlu0 %v4382_v41, %s4019_s21 }
 0xd65   : > { %2384 = vrot.lane.b32.xlu0 %v4396_v48, %s4019_s21 }
 0xdd4   : > { %v2165_v39 = vpop.xlane.xlu0 %2164 }
 0xdd5   : > { %v2169_v40 = vsub.f32 %v2161_v30, %v2165_v39 }
 0xdd7   : > { %v2171_v42 = vmul.f32 1.442695, %v2169_v40 }
 0xdd8   : > { %v2190_v43 = vpop.permute.xlu0 %2189 }
 0xdd9   : > { %3720 = vpow2.f32 %v2171_v42  ;;  %3426 = vmatpush3.bf16.msra.mxu0 %v2190_v43 }
 0xdda   : > { %3443 = vmatprep.subr.bf16.mxu0 %v4010_v0 }
 0xddc   : > { %v2335_v4 = vpop.permute.xlu0 %2334 }
 0xde0   : > { %v2385_v6 = vpop.permute.xlu0 %2384 }
 0xde3   : > { %v3721_v45 = vpop.eup %3720 }
 0xde4   : > { %v2175_v47 = vsel %vm707_vm1, %v3721_v45, 0.0 }
 0xde5   : > { %2176 = vadd.xlane.f32.xlu1 %v2175_v47 }
 0xdf6   : > { %2336 = vrot.lane.b32.xlu1 %v4373_v32, %s4019_s21 }
 0xdfa   : > { %2386 = vrot.lane.b32.xlu1 %v4384_v44, %s4019_s21 }
 0xe1a   : > { %v2155_v49 = vpop.f32.mrb[40].mxu1 }
 0xe1b   : > { %v2162_v50 = vsel %vm704_vm2, -1e+11, %v2155_v49  ;;  %v3423_v51 = vpop.f32.mrb[41].mxu1 }
 0xe1c   : > { %v2158_v55 = vpop.f32.mrb[42].mxu1  ;;  %v2166_v56 = vsel %vm707_vm1, %v2162_v50, -inf }
 0xe1d   : > { %v3424_v57 = vpop.f32.mrb[43].mxu1 }
 0xe1e   : > { %2167 = vmax.xlane.f32.xlu1 %v2166_v56 }
 0xe72   : > { %v2177_v58 = vpop.xlane.xlu1 %2176 }
 0xe73   : > { %3722 = vrcp.f32 %v2177_v58 }
 0xe76   : > { %v2337_v62 = vpop.permute.xlu1 %2336 }
 0xe77   : > { %v2342_v1 = vsel %vm707_vm1, %v2337_v62, 0 }
 0xe7a   : > { %v2387_v2 = vpop.permute.xlu1 %2386 }
 0xe7b   : > { %v2392_v5 = vsel %vm707_vm1, %v2387_v2, 0 }
 0xe7d   : > { %v3723_v59 = vpop.eup %3722 }
 0xe7e   : > { %v2183_v60 = vmul.f32 %v3723_v59, %v3721_v45 }
 0xe80   : > { %v2185_v61 = vmul.f32 %v2183_v60, %v4444_v26 }
 0xe82   : > { %v2187_v63 = vpack.c.bf16 %v2185_v61, %v2185_v61 }
 0xe84   : > { %3428 = vmatmul.mubr.msk.bf16.vlgmr.msra.gmra.mrb[60].mxu0 %vm707_vm1, %v2187_v63 }
 0xe85   : > { %3444 = vmatpush3.bf16.xpose.msra.mxu0 %v2342_v1  ;;  %3445 = vmatprep.mubr.msk.bf16.mxu0 %vm4012_vm0, %v4010_v0 }
 0xe86   : > { %3449 = vmatprep.subr.bf16.mxu0 %v4010_v0 }
 0xe8c   : > { %3446 = vmatmul.mubr.msk.bf16.vlgmr.msra.gmra.mrb[64].mxu0 %vm707_vm1, %v2335_v4 }
 0xe8d   : > { %3450 = vmatpush3.bf16.xpose.msra.mxu0 %v2392_v5  ;;  %3451 = vmatprep.mubr.msk.bf16.mxu0 %vm4012_vm0, %v4010_v0 }
 0xe8e   : > { %3461 = vmatprep.subr.bf16.mxu0 %v4010_v0 }
 0xe94   : > { %3452 = vmatmul.mubr.msk.bf16.vlgmr.msra.gmra.mrb[68].mxu0 %vm707_vm1, %v2385_v6 }
 0xe95   : > { %3463 = vmatprep.mubr.msk.bf16.mxu0 %vm4012_vm0, %v4010_v0 }
 0xeab   : > { %v2168_v7 = vpop.xlane.xlu1 %2167 }
 0xeac   : > { %v2170_v8 = vsub.f32 %v2162_v50, %v2168_v7 }
 0xeae   : > { %v2173_v9 = vmul.f32 1.442695, %v2170_v8 }
 0xeb0   : > { %3724 = vpow2.f32 %v2173_v9  ;;  %v3678_v9 = vld [vmem:[#allocation11 + $0x30] sm:$0xff]  }
 0xeba   : > { %v3725_v10 = vpop.eup %3724 }
 0xebb   : > { %v2178_v11 = vsel %vm707_vm1, %v3725_v10, 0.0 }
 0xebc   : > { %2179 = vadd.xlane.f32.xlu0 %v2178_v11 }
 0xed2   : > { %2235 = vrot.lane.b32.xlu0 %v4386_v46, %s4018_s26 }
 0xed6   : > { %2508 = vrot.lane.b32.xlu0 %v4386_v46, %s4019_s21 }
 0xeda   : > { %2609 = vrot.lane.b32.xlu0 %v4373_v32, %s4020_s1 }
 0xede   : > { %2659 = vrot.lane.b32.xlu0 %v4384_v44, %s4020_s1 }
 0xee2   : > { %2607 = vrot.lane.b32.xlu0 %v4382_v41, %s4020_s1 }
 0xf49   : > { %v2180_v12 = vpop.xlane.xlu0 %2179 }
 0xf4a   : > { %3726 = vrcp.f32 %v2180_v12 }
 0xf4d   : > { %v2236_v13 = vpop.permute.xlu0 %2235 }
 0xf4e   : > { %3432 = vmatpush3.bf16.msra.mxu1 %v2236_v13 }
 0xf4f   : > { %3437 = vmatprep.subr.bf16.mxu1 %v4010_v0 }
 0xf51   : > { %v2509_v15 = vpop.permute.xlu0 %2508 }
 0xf52   : > { %3462 = vmatpush3.bf16.msra.mxu0 %v2509_v15 }
 0xf53   : > { %3473 = vmatprep.subr.bf16.mxu0 %v4010_v0 }
 0xf54   : > { %v3727_v34 = vpop.eup %3726 }
 0xf55   : > { %v2184_v52 = vmul.f32 %v3727_v34, %v3725_v10  ;;  %v2610_v2 = vpop.permute.xlu0 %2609 }
 0xf56   : > { %v2615_v6 = vsel %vm707_vm1, %v2610_v2, 0 }
 0xf57   : > { %v2229_v53 = vpop.f32.mrb[60].mxu0  ;;  %v2186_v32 = vmul.f32 %v2184_v52, %v4427_v14 }
 0xf58   : > { %v3429_v16 = vpop.f32.mrb[61].mxu0 }
 0xf59   : > { %v2232_v44 = vpop.f32.mrb[62].mxu0  ;;  %v2188_v17 = vpack.c.bf16 %v2186_v32, %v2186_v32  ;;  %v2660_v7 = vpop.permute.xlu0 %2659 }
 0xf5a   : > { %v3430_v18 = vpop.f32.mrb[63].mxu0  ;;  %v2665_v32 = vsel %vm707_vm1, %v2660_v7, 0 }
 0xf5b   : > { %3434 = vmatmul.mubr.msk.bf16.vlgmr.msra.gmra.mrb[44].mxu1 %vm707_vm1, %v2188_v17 }
 0xf5c   : > { %3439 = vmatprep.mubr.msk.bf16.mxu1 %vm4012_vm0, %v4010_v0  ;;  %3438 = vmatpush3.bf16.msra.mxu1 %v3677_v31 }
 0xf5d   : > { %3455 = vmatprep.subr.bf16.mxu1 %v4010_v0  ;;  %v2608_v8 = vpop.permute.xlu0 %2607 }
 0xf5f   : > { %v2378_v41 = vpop.f32.mrb[64].mxu0 }
 0xf60   : > { %v2434_v19 = vsel %vm703_vm3, -1e+11, %v2378_v41  ;;  %v3447_v20 = vpop.f32.mrb[65].mxu0 }
 0xf61   : > { %v2381_v21 = vpop.f32.mrb[66].mxu0  ;;  %v2436_v22 = vsel %vm707_vm1, %v2434_v19, -inf }
 0xf62   : > { %2437 = vmax.xlane.f32.xlu1 %v2436_v22  ;;  %v3448_v23 = vpop.f32.mrb[67].mxu0 }
 0xf67   : > { %v2428_v24 = vpop.f32.mrb[68].mxu0 }
 0xf68   : > { %v2435_v25 = vsel %vm704_vm2, -1e+11, %v2428_v24  ;;  %v3453_v27 = vpop.f32.mrb[69].mxu0 }
 0xf69   : > { %v2431_v28 = vpop.f32.mrb[70].mxu0  ;;  %v2439_v29 = vsel %vm707_vm1, %v2435_v25, -inf }
 0xf6a   : > { %2440 = vmax.xlane.f32.xlu1 %v2439_v29  ;;  %v3454_v30 = vpop.f32.mrb[71].mxu0 }
 0xfef   : > { %v2438_v33 = vpop.xlane.xlu1 %2437 }
 0xff0   : > { %v2442_v36 = vsub.f32 %v2434_v19, %v2438_v33 }
 0xff2   : > { %v2444_v37 = vmul.f32 1.442695, %v2442_v36 }
 0xff4   : > { %3728 = vpow2.f32 %v2444_v37 }
 0xff7   : > { %v2441_v38 = vpop.xlane.xlu1 %2440 }
 0xff8   : > { %v2443_v39 = vsub.f32 %v2435_v25, %v2441_v38 }
 0xffa   : > { %v2446_v40 = vmul.f32 1.442695, %v2443_v39 }
 0xffc   : > { %3730 = vpow2.f32 %v2446_v40 }
 0xffe   : > { %v3729_v42 = vpop.eup %3728 }
 0xfff   : > { %v2448_v43 = vsel %vm707_vm1, %v3729_v42, 0.0 }
0x1000   : > { %2449 = vadd.xlane.f32.xlu1 %v2448_v43 }
0x1006   : > { %v3731_v45 = vpop.eup %3730 }
0x1007   : > { %v2451_v47 = vsel %vm707_vm1, %v3731_v45, 0.0 }
0x1008   : > { %2452 = vadd.xlane.f32.xlu1 %v2451_v47 }
0x1019   : > { %2462 = vrot.lane.b32.xlu1 %v4375_v35, %s4019_s21 }
0x101d   : > { %2657 = vrot.lane.b32.xlu1 %v4396_v48, %s4020_s1 }
0x102e   : > { %v2275_v49 = vpop.f32.mrb[44].mxu1 }
0x102f   : > { %v2281_v50 = vpack.c.bf16 %v2275_v49, %v2229_v53  ;;  %v3435_v51 = vpop.f32.mrb[45].mxu1 }
0x1030   : > { %v2278_v55 = vpop.f32.mrb[46].mxu1 }
0x1031   : > { %v3436_v56 = vpop.f32.mrb[47].mxu1  ;;  %3440 = vmatmul.mubr.msk.bf16.vlgmr.msra.gmra.mrb[20].mxu1 %vm707_vm1, %v2281_v50 }
0x1032   : > { %3457 = vmatprep.mubr.msk.bf16.mxu1 %vm4012_vm0, %v4010_v0 }
0x108d   : > { %v2450_v57 = vpop.xlane.xlu1 %2449 }
0x108e   : > { %3732 = vrcp.f32 %v2450_v57 }
0x1095   : > { %v2453_v58 = vpop.xlane.xlu1 %2452 }
0x1096   : > { %3734 = vrcp.f32 %v2453_v58 }
0x1098   : > { %v3733_v59 = vpop.eup %3732 }
0x1099   : > { %v2456_v60 = vmul.f32 %v3733_v59, %v3729_v42  ;;  %v2463_v61 = vpop.permute.xlu1 %2462 }
0x109a   : > { %3456 = vmatpush3.bf16.msra.mxu1 %v2463_v61 }
0x109b   : > { %v2458_v48 = vmul.f32 %v2456_v60, %v4444_v26  ;;  %3467 = vmatprep.subr.bf16.mxu1 %v4010_v0 }
0x109d   : > { %v2460_v62 = vpack.c.bf16 %v2458_v48, %v2458_v48  ;;  %v2658_v41 = vpop.permute.xlu1 %2657 }
0x109f   : > { %3458 = vmatmul.mubr.msk.bf16.vlgmr.msra.gmra.mrb[48].mxu1 %vm707_vm1, %v2460_v62 }
0x10a0   : > { %v3735_v63 = vpop.eup %3734  ;;  %3469 = vmatprep.mubr.msk.bf16.mxu1 %vm4012_vm0, %v4010_v0  ;;  %3468 = vmatpush3.bf16.msra.mxu1 %v3678_v9 }
0x10a1   : > { %v2457_v1 = vmul.f32 %v3735_v63, %v3731_v45  ;;  %3479 = vmatprep.subr.bf16.mxu1 %v4010_v0 }
0x10a3   : > { %v2459_v4 = vmul.f32 %v2457_v1, %v4427_v14 }
0x10a5   : > { %v2461_v5 = vpack.c.bf16 %v2459_v4, %v2459_v4 }
0x10a7   : > { %3464 = vmatmul.mubr.msk.bf16.vlgmr.msra.gmra.mrb[72].mxu0 %vm707_vm1, %v2461_v5 }
0x10a8   : > { %3474 = vmatpush3.bf16.xpose.msra.mxu0 %v2615_v6  ;;  %3475 = vmatprep.mubr.msk.bf16.mxu0 %vm4012_vm0, %v4010_v0 }
0x10a9   : > { %3485 = vmatprep.subr.bf16.mxu0 %v4010_v0 }
0x10af   : > { %3476 = vmatmul.mubr.msk.bf16.vlgmr.msra.gmra.mrb[76].mxu0 %vm707_vm1, %v2608_v8 }
0x10b0   : > { %3487 = vmatprep.mubr.msk.bf16.mxu0 %vm4012_vm0, %v4010_v0 }
0x1172   : > { %v2502_v10 = vpop.f32.mrb[48].mxu1 }
0x1173   : > { %v3459_v11 = vpop.f32.mrb[49].mxu1 }
0x1174   : > { %v2505_v12 = vpop.f32.mrb[50].mxu1 }
0x1175   : > { %v3460_v13 = vpop.f32.mrb[51].mxu1 }
0x117a   : > { %v2548_v15 = vpop.f32.mrb[72].mxu0 }
0x117b   : > { %v2554_v34 = vpack.c.bf16 %v2548_v15, %v2502_v10  ;;  %v3465_v52 = vpop.f32.mrb[73].mxu0 }
0x117c   : > { %v2551_v53 = vpop.f32.mrb[74].mxu0 }
0x117d   : > { %v3466_v16 = vpop.f32.mrb[75].mxu0  ;;  %3470 = vmatmul.mubr.msk.bf16.vlgmr.msra.gmra.mrb[20].mxu1 %vm707_vm1, %v2554_v34 }
0x117e   : > { %3480 = vmatpush3.bf16.xpose.msra.mxu1 %v2665_v32  ;;  %3481 = vmatprep.mubr.msk.bf16.mxu1 %vm4012_vm0, %v4010_v0 }
0x117f   : > { %3491 = vmatprep.subr.bf16.mxu1 %v4010_v0 }
0x1182   : > { %v2651_v44 = vpop.f32.mrb[76].mxu0 }
0x1183   : > { %v2707_v17 = vsel %vm703_vm3, -1e+11, %v2651_v44  ;;  %v3477_v18 = vpop.f32.mrb[77].mxu0 }
0x1184   : > { %v2654_v19 = vpop.f32.mrb[78].mxu0  ;;  %v2709_v20 = vsel %vm707_vm1, %v2707_v17, -inf }
0x1185   : > { %3482 = vmatmul.mubr.msk.bf16.vlgmr.msra.gmra.mrb[52].mxu1 %vm707_vm1, %v2658_v41  ;;  %2710 = vmax.xlane.f32.xlu0 %v2709_v20  ;;  %v3478_v21 = vpop.f32.mrb[79].mxu0 }
0x1186   : > { %3493 = vmatprep.mubr.msk.bf16.mxu1 %vm4012_vm0, %v4010_v0 }
0x1212   : > { %v2711_v22 = vpop.xlane.xlu0 %2710 }
0x1213   : > { %v2715_v23 = vsub.f32 %v2707_v17, %v2711_v22 }
0x1215   : > { %v2717_v24 = vmul.f32 1.442695, %v2715_v23 }
0x1217   : > { %3736 = vpow2.f32 %v2717_v24 }
0x1221   : > { %v3737_v25 = vpop.eup %3736 }
0x1222   : > { %v2721_v3 = vsel %vm707_vm1, %v3737_v25, 0.0 }
0x1223   : > { %2722 = vadd.xlane.f32.xlu0 %v2721_v3 }
0x1258   : > { %v2701_v27 = vpop.f32.mrb[52].mxu1 }
0x1259   : > { %v2708_v28 = vsel %vm704_vm2, -1e+11, %v2701_v27  ;;  %v3483_v29 = vpop.f32.mrb[53].mxu1 }
0x125a   : > { %v2704_v30 = vpop.f32.mrb[54].mxu1  ;;  %v2712_v31 = vsel %vm707_vm1, %v2708_v28, -inf }
0x125b   : > { %2713 = vmax.xlane.f32.xlu1 %v2712_v31  ;;  %v3484_v33 = vpop.f32.mrb[55].mxu1 }
0x126c   : > { %2781 = vrot.lane.b32.xlu1 %v4386_v46, %s4020_s1 }
0x12b0   : > { %v2723_v42 = vpop.xlane.xlu0 %2722 }
0x12e8   : > { %v2714_v36 = vpop.xlane.xlu1 %2713 }
0x12e9   : > { %v2716_v37 = vsub.f32 %v2708_v28, %v2714_v36 }
0x12eb   : > { %v2719_v38 = vmul.f32 1.442695, %v2716_v37 }
0x12ec   : > { %v2782_v39 = vpop.permute.xlu1 %2781 }
0x12ed   : > { %3738 = vpow2.f32 %v2719_v38  ;;  %3492 = vmatpush3.bf16.msra.mxu1 %v2782_v39 }
0x12ee   : > { %3497 = vmatprep.subr.bf16.mxu1 %v4010_v0  ;;  %3740 = vrcp.f32 %v2723_v42 }
0x12f7   : > { %v3739_v40 = vpop.eup %3738 }
0x12f8   : > { %v2724_v54 = vsel %vm707_vm1, %v3739_v40, 0.0  ;;  %v3741_v43 = vpop.eup %3740 }
0x12f9   : > { %2725 = vadd.xlane.f32.xlu0 %v2724_v54  ;;  %v2729_v45 = vmul.f32 %v3741_v43, %v3737_v25 }
0x12fb   : > { %v2731_v47 = vmul.f32 %v2729_v45, %v4444_v26 }
0x12fd   : > { %v2733_v50 = vpack.c.bf16 %v2731_v47, %v2731_v47 }
0x130f   : > { %2735 = vrot.lane.b32.xlu0 %v4375_v35, %s4020_s1  ;;  %v3679_v35 = vld [vmem:[#allocation11 + $0x38] sm:$0xff]  }
0x1386   : > { %v2726_v46 = vpop.xlane.xlu0 %2725 }
0x1387   : > { %3742 = vrcp.f32 %v2726_v46 }
0x138a   : > { %v2736_v49 = vpop.permute.xlu0 %2735 }
0x138b   : > { %3486 = vmatpush3.bf16.msra.mxu0 %v2736_v49 }
0x138e   : > { %3488 = vmatmul.mubr.msk.bf16.vlgmr.msra.gmra.mrb[80].mxu0 %vm707_vm1, %v2733_v50 }
0x1391   : > { %v3743_v51 = vpop.eup %3742 }
0x1392   : > { %v2730_v55 = vmul.f32 %v3743_v51, %v3739_v40 }
0x1394   : > { %v2732_v56 = vmul.f32 %v2730_v55, %v4427_v14 }
0x1396   : > { %v2734_v57 = vpack.c.bf16 %v2732_v56, %v2732_v56 }
0x1398   : > { %3494 = vmatmul.mubr.msk.bf16.vlgmr.msra.gmra.mrb[56].mxu1 %vm707_vm1, %v2734_v57 }
0x1399   : > { %3499 = vmatprep.mubr.msk.bf16.mxu1 %vm4012_vm0, %v4010_v0  ;;  %3498 = vmatpush3.bf16.msra.mxu1 %v3679_v35 }
0x1461   : > { %v2775_v26 = vpop.f32.mrb[80].mxu0 }
0x1462   : > { %v3489_v58 = vpop.f32.mrb[81].mxu0 }
0x1463   : > { %v2778_v59 = vpop.f32.mrb[82].mxu0 }
0x1464   : > { %v3490_v60 = vpop.f32.mrb[83].mxu0 }
0x146b   : > { %v2821_v61 = vpop.f32.mrb[56].mxu1 }
0x146c   : > { %v2827_v48 = vpack.c.bf16 %v2821_v61, %v2775_v26  ;;  %v3495_v62 = vpop.f32.mrb[57].mxu1 }
0x146d   : > { %v2824_v63 = vpop.f32.mrb[58].mxu1 }
0x146e   : > { %v3496_v14 = vpop.f32.mrb[59].mxu1  ;;  %3500 = vmatmul.mubr.msk.bf16.vlgmr.msra.gmra.mrb[20].mxu1 %vm707_vm1, %v2827_v48 }
0x1541   : > { %v2871_v0 = vpop.f32.mrb[20].mxu1 }
0x1542   : > { %2880 = vst [vmem:[%s391_s14] sm:$0xff] %v2871_v0  ;;  %v3501_v1 = vpop.f32.mrb[21].mxu1 }
0x1543   : > { %v2874_v2 = vpop.f32.mrb[22].mxu1 }
0x1544   : > { %2881 = vst [vmem:[%s391_s14 + $0x8] sm:$0xff] %v2874_v2  ;;  %v3502_v4 = vpop.f32.mrb[23].mxu1 }
0x1545   : > { %3931 = shalt.err (!%p3928_p0)
}
0x1546   : > { %s3932_s7 = scalar_lea.hbm %s4757_s19, 256  ;;  %s3936_s16 = scalar_lea.hbm %s4867_s28, 512 }
0x1547   : > { %p3933_p8 = scmp.ne.s32.totalorder %s4757_s19, %s3932_s7  ;;  %p3937_p5 = scmp.lt.u32.totalorder %s4757_s19, %s4867_s28 }
0x1548   : > { %p3938_p12 = scmp.lt.u32.totalorder %s3936_s16, %s3932_s7  ;;  %p3940_p7 = scmp.lt.u32.totalorder %s3932_s7, %s4757_s19 }
0x1549   : > { %p3934_p1 = pnand %p3933_p8, %p4868_p11 }
0x154a   : > { %p3939_p3 = por %p3938_p12, %p3937_p5 }
0x154b   : > { %p3935_p2 = pneg %p3934_p1 }
0x154c   : > { %p3941_p6 = por %p3940_p7, %p3939_p3 }
0x154e   : > { %p3942_p13 = pnand %p3941_p6, %p3935_p2 }
0x1550   : > { %3945 = shalt.err (!%p3942_p13)
}
0x1551   : > { %s4022_s17 = smov 128   ;;  %s4023_s15 = smov 8  }
0x1552   : > { %3549 = dma.vmem_to_hbm [thread:$0]  (%p4868_p11), %s4752_s27, 256, %s4757_s19, %s2883_s13, %s4022_s17, %s4022_s17, %s4023_s15  }
0x1553 PF: > { %s4869_s26 = sld [smem:[#allocation19_spill]]  ;;  %s4870_s21 = sld [smem:[#allocation24_spill]] }
0x1554   : > { %p4872_p10 = scmp.ge.s32.totalorder %s3996_s24, 2 }
0x1559   : > { %s2911_s1 = sand.u32 1, %s4869_s26   ;;  %p4871_p9 = scmp.ne.s32.totalorder %s4870_s21, 0 }
0x155a   : > { %s2912_s14 = scalar_lea.sflag [#allocation4], %s2911_s1 }
0x155b   : > { %p3572_p4 = pnand %p4872_p10, %p4871_p9 }
0x155d   : > { %3979 = dma.done.wait (!%p3572_p4), %s2912_s14, 256  }
0x155e   : > { %3981 = vsyncadd (!%p3572_p4), %s2912_s14, 4294967040  ;;  %s4873_s24 = sld [smem:[#allocation21_spill]]  ;;  %s4874_s20 = sld [smem:[#allocation20_spill]] }
0x155f   : > { %s4875_s23 = sld [smem:[#allocation22_spill]]  ;;  %s4876_s21 = smov %s3988_s22 }
0x1564   : > { %p24_p0 = scmp.ge.s32.totalorder %s4873_s24, 4   ;;  %s4877_s22 = smov %s4874_s20 }
0x1566   :  { %26 = sbr.rel (!%p24_p0) target bundleno = 13 (0xd), region = 125 }
0x156d   :  { %2917 = vsyncpa [#allocation3], 1 }
0x156e   :  { %2919 = vsyncpa [#allocation3 + $0x1], 1 }
0x156f   :  { %2920 = vsyncpa [#allocation6], 1 }
0x1570   :  { %2922 = vsyncpa [#allocation6 + $0x1], 1 }
0x1571   :  { %2923 = vsyncpa [#allocation9], 1 }
0x1572   :  { %2924 = vsyncpa [#allocation12], 1 }
0x1573   :  { %2925 = vsyncpa [#allocation4], 1 }
0x1574   :  { %2927 = vsyncpa [#allocation4 + $0x1], 1 }

</bundles_post_ra>
